<compile_context>
chip_gen: v6e
topology: v6e:2x2x1
jax: 0.10.0
libtpu: 0.0.40
codegen_flags: <defaults>
</compile_context>

<pallas_src>
import numpy as np

import jax
import jax.numpy as jnp
from jax.experimental import pallas as pl
from jax.experimental.pallas import tpu as pltpu


# --------------------------------------------------------------------------- helpers
def _vmem_capacity_bytes():
    try:
        cap = int(pltpu.get_tpu_info().vmem_capacity_bytes)
        if cap > 0:
            return cap
    except Exception:
        pass
    return 128 * 1024 * 1024


def _tensorcore_count():
    """Best-effort TensorCore-per-chip count (2 on v7x); safe fallback of 1."""
    try:
        info = pltpu.get_tpu_info()
        for name in ("num_cores", "core_count", "tensorcore_count",
                     "num_tensorcores", "cores_per_chip"):
            n = getattr(info, name, None)
            if isinstance(n, (int, np.integer)) and int(n) >= 1:
                return int(n)
    except Exception:
        pass
    try:
        n = getattr(jax.devices()[0], "num_cores", None)
        if isinstance(n, (int, np.integer)) and int(n) >= 1:
            return int(n)
    except Exception:
        pass
    return 1


def _overlap_segments(ch_a, ch_b):
    """Static channel-overlap segments between two channel concatenations.

    Returns [(ia, a_lo, a_hi, ib, b_lo, b_hi)] covering the concatenated channel
    axis; when the splits are aligned every segment is a whole branch on both sides.
    """
    off_a = np.concatenate([[0], np.cumsum(ch_a)]).astype(np.int64)
    off_b = np.concatenate([[0], np.cumsum(ch_b)]).astype(np.int64)
    cuts = sorted(set(off_a.tolist()) | set(off_b.tolist()))
    segs = []
    for lo, hi in zip(cuts[:-1], cuts[1:]):
        ia = int(np.searchsorted(off_a, lo, side="right")) - 1
        ib = int(np.searchsorted(off_b, lo, side="right")) - 1
        segs.append((ia, int(lo - off_a[ia]), int(hi - off_a[ia]),
                     ib, int(lo - off_b[ib]), int(hi - off_b[ib])))
    return segs


# --------------------------------------------------------------------------- kernel
def _make_kernel(*, n_in, K, V, v_tile, tiles_per_split, need_mask,
                 feat_terms, syn_terms):
    """feat_terms / syn_terms: lists of (a_idx, a_slice, b_idx, b_slice) into the
    streamed-input tuple.  A slice (static Python slice) picks channels out of a
    3-D (B, C, v_tile) block; None means "use the whole (rows, v_tile) block"."""

    def kernel(*refs):
        in_refs = refs[:n_in]
        ce_out, cnt_out, feat_out, syn_out = refs[n_in:n_in + 4]
        ce_acc, cnt_acc, feat_acc, syn_acc = refs[n_in + 4:n_in + 8]

        fuse_ref, gt_ref = in_refs[0], in_refs[1]
        pid_s = pl.program_id(0)         # per-TensorCore V-range split (parallel)
        pid_v = pl.program_id(1)         # V tile within the split (arbitrary)

        @pl.when(pid_v == 0)
        def _init():
            ce_acc[...] = jnp.zeros_like(ce_acc)
            cnt_acc[...] = jnp.zeros_like(cnt_acc)
            feat_acc[...] = jnp.zeros_like(feat_acc)
            syn_acc[...] = jnp.zeros_like(syn_acc)

        if need_mask:
            v_local = jax.lax.broadcasted_iota(jnp.int32, (1, v_tile), 1)
            v_global = v_local + (pid_s * tiles_per_split + pid_v) * v_tile
            lane_ok = v_global < V                                    # (1, Vt)

        # ---- masked cross entropy over gt>0 vertices: per-lane partial sums ----
        fuse = fuse_ref[...].astype(jnp.float32)                      # (B, K, Vt)
        gt = gt_ref[...].astype(jnp.int32)                            # (B, Vt)
        m = jnp.max(fuse, axis=1, keepdims=True)                      # (B, 1, Vt)
        lse = m[:, 0, :] + jnp.log(jnp.sum(jnp.exp(fuse - m), axis=1))  # (B, Vt)
        k_ids = jax.lax.broadcasted_iota(jnp.int32, (1, K, 1), 1)     # (1, K, 1)
        sel = jnp.sum(jnp.where(k_ids == (gt[:, None, :] - 1), fuse, 0.0),
                      axis=1)                                         # fuse[b, gt-1, v]
        ce_pos = lse - sel                                            # -log_softmax[tgt]
        sup = gt > 0
        if need_mask:
            sup = jnp.logical_and(sup, lane_ok)
        ce_acc[...] += jnp.sum(jnp.where(sup, ce_pos, 0.0), axis=0, keepdims=True)
        cnt_acc[...] += jnp.sum(sup.astype(jnp.float32), axis=0, keepdims=True)

        # ---- SSE terms (loss_feat / loss_syn): per-lane partial sums -----------
        cache = {}

        def read_f32(idx, sl):
            key = (idx, None if sl is None else (sl.start, sl.stop))
            if key not in cache:
                r = in_refs[idx]
                x = r[...] if sl is None else r[:, sl, :]
                cache[key] = x.astype(jnp.float32)
            return cache[key]

        def sse_lanes(terms):
            total = None
            for ia, sa, ib, sb in terms:
                d = read_f32(ia, sa) - read_f32(ib, sb)
                sq = d * d
                if need_mask:
                    ok = lane_ok if sq.ndim == 2 else lane_ok[:, None, :]
                    sq = jnp.where(ok, sq, 0.0)      # select, never multiply-by-mask
                part = jnp.sum(sq, axis=tuple(range(sq.ndim - 1)))[None, :]  # (1, Vt)
                total = part if total is None else total + part
            return total

        feat_acc[...] += sse_lanes(feat_terms)
        syn_acc[...] += sse_lanes(syn_terms)

        # ---- one cross-lane reduce per split; divisions & lam_* live in wrapper ----
        @pl.when(pid_v == tiles_per_split - 1)
        def _finalize():
            for acc, out in ((ce_acc, ce_out), (cnt_acc, cnt_out),
                             (feat_acc, feat_out), (syn_acc, syn_out)):
                out[...] = jnp.broadcast_to(jnp.sum(acc[...]).reshape(1, 1, 1),
                                            (1, 8, 128))

    return kernel


# --------------------------------------------------------------------------- wrapper
def syn_indiv_loss_pallas(fuse, gt, orgin_infeat, recon_infeat,
                          orgin_outfeat, recon_outfeat, lam_feat, lam_syn,
                          *, v_tile=None, num_splits=None):
    """Returns (loss, loss_ce, loss_feat, loss_syn) as float32 scalars."""
    orgin_infeat = list(orgin_infeat)
    recon_infeat = list(recon_infeat)
    B, K, V = (int(s) for s in fuse.shape)

    feat_a = orgin_infeat + [orgin_outfeat]        # left side of loss_feat's MSE
    feat_b = recon_infeat                          # right side
    ch_a = [int(x.shape[1]) for x in feat_a]
    ch_b = [int(x.shape[1]) for x in feat_b]
    assert sum(ch_a) == sum(ch_b), (
        "cat([*orgin_infeat, orgin_outfeat]) and cat(recon_infeat) must have the "
        "same total channel count (PyTorch's MSELoss requires this too)")
    c_feat = sum(ch_a)
    c_out = int(orgin_outfeat.shape[1])

    segs = _overlap_segments(ch_a, ch_b)
    aligned = all(a0 == 0 and a1 == ch_a[ia] and b0 == 0 and b1 == ch_b[ib]
                  for (ia, a0, a1, ib, b0, b1) in segs)

    # Streamed HBM inputs.  Aligned channel splits -> flatten (B,C,V)->(B*C,V)
    # (free, contiguous reshape) so blocks are dense 2-D slabs with no per-batch
    # sublane padding.  Mis-aligned splits keep 3-D blocks and the kernel slices
    # the static channel-overlap segments in VMEM (no wrapper-side concatenate).
    def prep(x):
        return x.reshape(-1, V) if aligned else x

    inputs = [fuse, gt]
    a_idx = []
    for x in feat_a:
        a_idx.append(len(inputs))
        inputs.append(prep(x))
    b_idx = []
    for x in feat_b:
        b_idx.append(len(inputs))
        inputs.append(prep(x))
    syn_b_idx = len(inputs)
    inputs.append(prep(recon_outfeat))             # orgin_outfeat streamed only once

    def ch_slice(lo, hi, full):
        return None if (lo == 0 and hi == full) else slice(int(lo), int(hi))

    feat_terms = [(a_idx[ia], ch_slice(a0, a1, ch_a[ia]),
                   b_idx[ib], ch_slice(b0, b1, ch_b[ib]))
                  for (ia, a0, a1, ib, b0, b1) in segs]
    syn_terms = [(a_idx[-1], None, syn_b_idx, None)]

    # ---- generation-aware V-tile selection ------------------------------------
    itemsize = lambda x: jnp.dtype(x.dtype).itemsize

    def padded_rows(x):                            # VMEM rows incl. 8-sublane padding
        lead = int(np.prod(x.shape[:-2])) if x.ndim > 2 else 1
        return lead * ((int(x.shape[-2]) + 7) // 8) * 8

    io_bytes_per_v = sum(padded_rows(x) * itemsize(x) for x in inputs)
    f32_rows_per_v = sum(padded_rows(x) for x in inputs)   # in-kernel f32 upcast temps
    acc_bytes_per_v = 4 * 8 * 4                    # four (1,v_tile) f32 lane accumulators
    vmem_per_v = 2 * io_bytes_per_v + 4 * f32_rows_per_v + acc_bytes_per_v

    vmem_cap = _vmem_capacity_bytes()
    # ~32 MiB working-set budget on v5e/v6e (128 MiB VMEM), ~24 MiB on v7x (64 MiB).
    budget = max(8 << 20, min(32 << 20, (vmem_cap * 3) // 8))

    if v_tile is None:
        cand = ((budget // max(1, vmem_per_v)) // 128) * 128
        if V <= 128 or cand >= V:
            v_tile = V
        else:
            v_tile = int(max(128, min(cand, (V // 128) * 128)))
    else:
        v_tile = int(v_tile)
        v_tile = V if v_tile >= V else max(128, (v_tile // 128) * 128)
        v_tile = min(v_tile, V)

    num_tiles = int(pl.cdiv(V, v_tile))
    need_mask = (V % v_tile) != 0

    # ---- split the V range across TensorCores (2 on v7x; no-op on v5e/v6e) -----
    if num_splits is None:
        num_splits = 2 if _tensorcore_count() >= 2 else 1
    num_splits = max(1, int(num_splits))
    if num_tiles % num_splits != 0:
        num_splits = 1                             # keep index maps exact
    tiles_per_split = num_tiles // num_splits

    idx2 = lambda s, v: (0, s * tiles_per_split + v)
    idx3 = lambda s, v: (0, 0, s * tiles_per_split + v)

    def feat_spec(x):
        if x.ndim == 2:
            return pl.BlockSpec((int(x.shape[0]), v_tile), idx2)
        return pl.BlockSpec((int(x.shape[0]), int(x.shape[1]), v_tile), idx3)

    in_specs = [pl.BlockSpec((B, K, v_tile), idx3),      # fuse
                pl.BlockSpec((B, v_tile), idx2)]         # gt
    in_specs += [feat_spec(x) for x in inputs[2:]]

    part_shape = jax.ShapeDtypeStruct((num_splits, 8, 128), jnp.float32)
    out_specs = tuple(pl.BlockSpec((1, 8, 128), lambda s, v: (s, 0, 0))
                      for _ in range(4))

    kernel = _make_kernel(n_in=len(inputs), K=K, V=V, v_tile=v_tile,
                          tiles_per_split=tiles_per_split, need_mask=need_mask,
                          feat_terms=feat_terms, syn_terms=syn_terms)

    n_feat_elems = B * c_feat * V
    n_syn_elems = B * c_out * V
    in_bytes = sum(int(np.prod(x.shape)) * itemsize(x) for x in inputs)
    cost = pl.CostEstimate(
        flops=int(8 * B * K * V + 3 * n_feat_elems + 3 * n_syn_elems),
        transcendentals=int(B * K * V + B * V),
        bytes_accessed=int(in_bytes + 4 * num_splits * 8 * 128 * 4))

    # <= 75% of physical VMEM (48 MiB on v7x; roomy on v5e/v6e's 128 MiB).
    vmem_limit = int(min((vmem_cap * 3) // 4,
                         max(32 << 20, vmem_per_v * v_tile + (8 << 20))))

    ce_p, cnt_p, feat_p, syn_p = pl.pallas_call(
        kernel,
        out_shape=(part_shape, part_shape, part_shape, part_shape),
        grid=(num_splits, tiles_per_split),
        in_specs=in_specs,
        out_specs=out_specs,
        scratch_shapes=[pltpu.VMEM((1, v_tile), jnp.float32) for _ in range(4)],
        compiler_params=pltpu.CompilerParams(
            dimension_semantics=("parallel", "arbitrary"),
            vmem_limit_bytes=vmem_limit),
        cost_estimate=cost,
    )(*inputs)

    # Tiny per-split combine (4 scalars per split), divisions and lam_* mixing.
    ce_sum = jnp.sum(ce_p[:, 0, 0])
    cnt = jnp.sum(cnt_p[:, 0, 0])
    loss_ce = ce_sum / cnt                               # NaN if no gt>0 (matches torch)
    loss_feat = jnp.sum(feat_p[:, 0, 0]) / jnp.float32(n_feat_elems)
    loss_syn = jnp.sum(syn_p[:, 0, 0]) / jnp.float32(n_syn_elems)
    loss = loss_ce + jnp.float32(lam_feat) * loss_feat + jnp.float32(lam_syn) * loss_syn
    return loss, loss_ce, loss_feat, loss_syn


# --------------------------------------------------------------------------- reference
def _reference(fuse, gt, orgin_infeat, recon_infeat, orgin_outfeat, recon_outfeat,
               lam_feat, lam_syn):
    """Pure-JAX mirror of the PyTorch forward."""
    B, K, V = fuse.shape
    logits = jnp.transpose(fuse, (0, 2, 1)).reshape(-1, K)
    labels = gt.reshape(-1)
    sup = labels > 0
    logp = jax.nn.log_softmax(logits, axis=-1)
    tgt = jnp.clip(labels - 1, 0, K - 1)
    nll = -jnp.take_along_axis(logp, tgt[:, None], axis=-1)[:, 0]
    loss_ce = jnp.sum(jnp.where(sup, nll, 0.0)) / jnp.sum(sup).astype(jnp.float32)
    a = jnp.concatenate([*orgin_infeat, orgin_outfeat], axis=1)
    b = jnp.concatenate(recon_infeat, axis=1)
    loss_feat = jnp.mean((a - b) ** 2)
    loss_syn = jnp.mean((orgin_outfeat - recon_outfeat) ** 2)
    loss = loss_ce + lam_feat * loss_feat + lam_syn * loss_syn
    return loss, loss_ce, loss_feat, loss_syn


if __name__ == "__main__":
    lam_feat, lam_syn = 0.3, 0.7
    root0, root1 = jax.random.split(jax.random.PRNGKey(0), 2)

    def make_case(key, V, in_ch, rec_ch, c_out):
        B, K = 2, 4
        keys = list(jax.random.split(key, 4 + len(in_ch) + len(rec_ch)))
        ki = iter(keys)
        fuse = jax.random.normal(next(ki), (B, K, V), jnp.float32)
        gt = jax.random.randint(next(ki), (B, V), 0, K + 1, dtype=jnp.int32)
        gt = gt.at[0, 0].set(K)                      # guarantee >=1 supervised vertex
        orgin_infeat = [jax.random.normal(next(ki), (B, c, V), jnp.float32)
                        for c in in_ch]
        recon_infeat = [jax.random.normal(next(ki), (B, c, V), jnp.float32)
                        for c in rec_ch]
        orgin_outfeat = jax.random.normal(next(ki), (B, c_out, V), jnp.float32)
        recon_outfeat = jax.random.normal(next(ki), (B, c_out, V), jnp.float32)
        return (fuse, gt, orgin_infeat, recon_infeat, orgin_outfeat, recon_outfeat)

    cases = [
        # aligned channel splits; partial last V tile; forced 2-way core split
        dict(args=make_case(root0, V=240, in_ch=[3, 5], rec_ch=[3, 5, 6], c_out=6),
             kw=dict(v_tile=128, num_splits=2)),
        # mis-aligned channel splits (3+5+6 vs 7+7): in-kernel segment slicing, auto tiling
        dict(args=make_case(root1, V=256, in_ch=[3, 5], rec_ch=[7, 7], c_out=6),
             kw=dict()),
    ]

    for case in cases:
        got = syn_indiv_loss_pallas(*case["args"], lam_feat, lam_syn, **case["kw"])
        got = jax.block_until_ready(got)
        want = _reference(*case["args"], lam_feat, lam_syn)
        for g, w in zip(got, want):
            np.testing.assert_allclose(np.asarray(g), np.asarray(w),
                                       rtol=2e-5, atol=2e-6)

    print("KERNEL_OK")
</pallas_src>

<mosaic_0001>
module attributes {stable_mosaic.version = 11 : i64} {
  func.func @kernel(%arg0: i32, %arg1: i32, %arg2: memref<2x4x128xf32, #tpu.memory_space<vmem>>, %arg3: memref<2x128xi32, #tpu.memory_space<vmem>>, %arg4: memref<6x128xf32, #tpu.memory_space<vmem>>, %arg5: memref<10x128xf32, #tpu.memory_space<vmem>>, %arg6: memref<12x128xf32, #tpu.memory_space<vmem>>, %arg7: memref<6x128xf32, #tpu.memory_space<vmem>>, %arg8: memref<10x128xf32, #tpu.memory_space<vmem>>, %arg9: memref<12x128xf32, #tpu.memory_space<vmem>>, %arg10: memref<12x128xf32, #tpu.memory_space<vmem>>, %arg11: memref<1x8x128xf32, #tpu.memory_space<vmem>>, %arg12: memref<1x8x128xf32, #tpu.memory_space<vmem>>, %arg13: memref<1x8x128xf32, #tpu.memory_space<vmem>>, %arg14: memref<1x8x128xf32, #tpu.memory_space<vmem>>, %arg15: memref<1x128xf32, #tpu.memory_space<vmem>>, %arg16: memref<1x128xf32, #tpu.memory_space<vmem>>, %arg17: memref<1x128xf32, #tpu.memory_space<vmem>>, %arg18: memref<1x128xf32, #tpu.memory_space<vmem>>) attributes {dimension_semantics = [#tpu.dimension_semantics<parallel>, #tpu.dimension_semantics<arbitrary>], iteration_bounds = array<i64: 2, 1>, scalar_prefetch = 0 : i64, scratch_operands = 4 : i64, tpu.core_type = #tpu.core_type<tc>, window_params = [{transform_indices = @transform_0, window_bounds = array<i64: 2, 4, 128>}, {transform_indices = @transform_1, window_bounds = array<i64: 2, 128>}, {transform_indices = @transform_2, window_bounds = array<i64: 6, 128>}, {transform_indices = @transform_3, window_bounds = array<i64: 10, 128>}, {transform_indices = @transform_4, window_bounds = array<i64: 12, 128>}, {transform_indices = @transform_5, window_bounds = array<i64: 6, 128>}, {transform_indices = @transform_6, window_bounds = array<i64: 10, 128>}, {transform_indices = @transform_7, window_bounds = array<i64: 12, 128>}, {transform_indices = @transform_8, window_bounds = array<i64: 12, 128>}, {transform_indices = @transform_9, window_bounds = array<i64: 1, 8, 128>}, {transform_indices = @transform_10, window_bounds = array<i64: 1, 8, 128>}, {transform_indices = @transform_11, window_bounds = array<i64: 1, 8, 128>}, {transform_indices = @transform_12, window_bounds = array<i64: 1, 8, 128>}]} {
    %c0_i32 = arith.constant 0 : i32
    %0 = arith.cmpi eq, %arg1, %c0_i32 : i32
    %1 = arith.extui %0 : i1 to i32
    %c0_i32_0 = arith.constant 0 : i32
    %2 = arith.cmpi ne, %1, %c0_i32_0 : i32
    scf.if %2 {
      %cst_53 = arith.constant 0.000000e+00 : f32
      %101 = vector.broadcast %cst_53 : f32 to vector<1x128xf32>
      %c0_54 = arith.constant 0 : index
      %c0_55 = arith.constant 0 : index
      %102 = vector.load %arg15[%c0_54, %c0_55] : memref<1x128xf32, #tpu.memory_space<vmem>>, vector<1x128xf32>
      tpu.vector_store %arg15[%c0_54, %c0_55], %101 {strides = array<i32>} : memref<1x128xf32, #tpu.memory_space<vmem>>, vector<1x128xf32>,
      %cst_56 = arith.constant 0.000000e+00 : f32
      %103 = vector.broadcast %cst_56 : f32 to vector<1x128xf32>
      %c0_57 = arith.constant 0 : index
      %c0_58 = arith.constant 0 : index
      %104 = vector.load %arg16[%c0_57, %c0_58] : memref<1x128xf32, #tpu.memory_space<vmem>>, vector<1x128xf32>
      tpu.vector_store %arg16[%c0_57, %c0_58], %103 {strides = array<i32>} : memref<1x128xf32, #tpu.memory_space<vmem>>, vector<1x128xf32>,
      %cst_59 = arith.constant 0.000000e+00 : f32
      %105 = vector.broadcast %cst_59 : f32 to vector<1x128xf32>
      %c0_60 = arith.constant 0 : index
      %c0_61 = arith.constant 0 : index
      %106 = vector.load %arg17[%c0_60, %c0_61] : memref<1x128xf32, #tpu.memory_space<vmem>>, vector<1x128xf32>
      tpu.vector_store %arg17[%c0_60, %c0_61], %105 {strides = array<i32>} : memref<1x128xf32, #tpu.memory_space<vmem>>, vector<1x128xf32>,
      %cst_62 = arith.constant 0.000000e+00 : f32
      %107 = vector.broadcast %cst_62 : f32 to vector<1x128xf32>
      %c0_63 = arith.constant 0 : index
      %c0_64 = arith.constant 0 : index
      %108 = vector.load %arg18[%c0_63, %c0_64] : memref<1x128xf32, #tpu.memory_space<vmem>>, vector<1x128xf32>
      tpu.vector_store %arg18[%c0_63, %c0_64], %107 {strides = array<i32>} : memref<1x128xf32, #tpu.memory_space<vmem>>, vector<1x128xf32>,
    } else {
    }
    %3 = tpu.iota {dimensions = array<i32: 1>} : vector<1x128xi32>
    %c1_i32 = arith.constant 1 : i32
    %4 = arith.muli %arg0, %c1_i32 : i32
    %5 = arith.addi %4, %arg1 : i32
    %c128_i32 = arith.constant 128 : i32
    %6 = arith.muli %5, %c128_i32 : i32
    %7 = vector.broadcast %6 : i32 to vector<1x128xi32>
    %8 = arith.addi %3, %7 : vector<1x128xi32>
    %c240_i32 = arith.constant 240 : i32
    %9 = vector.broadcast %c240_i32 : i32 to vector<1x128xi32>
    %10 = arith.cmpi slt, %8, %9 : vector<1x128xi32>
    %c0 = arith.constant 0 : index
    %c0_1 = arith.constant 0 : index
    %c0_2 = arith.constant 0 : index
    %11 = vector.load %arg2[%c0, %c0_1, %c0_2] : memref<2x4x128xf32, #tpu.memory_space<vmem>>, vector<2x4x128xf32>
    %c0_3 = arith.constant 0 : index
    %c0_4 = arith.constant 0 : index
    %12 = vector.load %arg3[%c0_3, %c0_4] : memref<2x128xi32, #tpu.memory_space<vmem>>, vector<2x128xi32>
    %cst = arith.constant dense<0xFF800000> : vector<2x128xf32>
    %13 = vector.multi_reduction <maximumf>, %11, %cst [1] : vector<2x4x128xf32> to vector<2x128xf32>
    %14 = vector.shape_cast %13 : vector<2x128xf32> to vector<2x1x128xf32>
    %15 = vector.shape_cast %14 : vector<2x1x128xf32> to vector<2x128xf32>
    %16 = vector.broadcast %14 : vector<2x1x128xf32> to vector<2x4x128xf32>
    %17 = arith.subf %11, %16 : vector<2x4x128xf32>
    %18 = math.exp %17 : vector<2x4x128xf32>
    %cst_5 = arith.constant dense<0.000000e+00> : vector<2x128xf32>
    %19 = vector.multi_reduction <add>, %18, %cst_5 [1] : vector<2x4x128xf32> to vector<2x128xf32>
    %20 = math.log %19 : vector<2x128xf32>
    %21 = arith.addf %15, %20 : vector<2x128xf32>
    %22 = tpu.iota {dimensions = array<i32: 1>} : vector<1x4x1xi32>
    %23 = vector.shape_cast %12 : vector<2x128xi32> to vector<2x1x128xi32>
    %c1_i32_6 = arith.constant 1 : i32
    %24 = vector.broadcast %c1_i32_6 : i32 to vector<2x1x128xi32>
    %25 = arith.subi %23, %24 : vector<2x1x128xi32>
    %26 = vector.broadcast %22 : vector<1x4x1xi32> to vector<2x4x128xi32>
    %27 = vector.broadcast %25 : vector<2x1x128xi32> to vector<2x4x128xi32>
    %28 = arith.cmpi eq, %26, %27 : vector<2x4x128xi32>
    %cst_7 = arith.constant 0.000000e+00 : f32
    %29 = vector.broadcast %cst_7 : f32 to vector<2x4x128xf32>
    %30 = arith.select %28, %11, %29 : vector<2x4x128xi1>, vector<2x4x128xf32>
    %cst_8 = arith.constant dense<0.000000e+00> : vector<2x128xf32>
    %31 = vector.multi_reduction <add>, %30, %cst_8 [1] : vector<2x4x128xf32> to vector<2x128xf32>
    %32 = arith.subf %21, %31 : vector<2x128xf32>
    %c0_i32_9 = arith.constant 0 : i32
    %33 = vector.broadcast %c0_i32_9 : i32 to vector<2x128xi32>
    %34 = arith.cmpi sgt, %12, %33 : vector<2x128xi32>
    %35 = vector.broadcast %10 : vector<1x128xi1> to vector<2x128xi1>
    %36 = arith.andi %34, %35 : vector<2x128xi1>
    %c0_10 = arith.constant 0 : index
    %c0_11 = arith.constant 0 : index
    %37 = vector.load %arg15[%c0_10, %c0_11] : memref<1x128xf32, #tpu.memory_space<vmem>>, vector<1x128xf32>
    %cst_12 = arith.constant 0.000000e+00 : f32
    %38 = vector.broadcast %cst_12 : f32 to vector<2x128xf32>
    %39 = arith.select %36, %32, %38 : vector<2x128xi1>, vector<2x128xf32>
    %cst_13 = arith.constant dense<0.000000e+00> : vector<128xf32>
    %40 = vector.multi_reduction <add>, %39, %cst_13 [0] : vector<2x128xf32> to vector<128xf32>
    %41 = vector.shape_cast %40 : vector<128xf32> to vector<1x128xf32>
    %42 = arith.addf %37, %41 : vector<1x128xf32>
    %c0_14 = arith.constant 0 : index
    %c0_15 = arith.constant 0 : index
    %43 = vector.load %arg15[%c0_14, %c0_15] : memref<1x128xf32, #tpu.memory_space<vmem>>, vector<1x128xf32>
    tpu.vector_store %arg15[%c0_14, %c0_15], %42 {strides = array<i32>} : memref<1x128xf32, #tpu.memory_space<vmem>>, vector<1x128xf32>,
    %c0_16 = arith.constant 0 : index
    %c0_17 = arith.constant 0 : index
    %44 = vector.load %arg16[%c0_16, %c0_17] : memref<1x128xf32, #tpu.memory_space<vmem>>, vector<1x128xf32>
    %45 = arith.extui %36 : vector<2x128xi1> to vector<2x128xi32>
    %46 = arith.sitofp %45 : vector<2x128xi32> to vector<2x128xf32>
    %cst_18 = arith.constant dense<0.000000e+00> : vector<128xf32>
    %47 = vector.multi_reduction <add>, %46, %cst_18 [0] : vector<2x128xf32> to vector<128xf32>
    %48 = vector.shape_cast %47 : vector<128xf32> to vector<1x128xf32>
    %49 = arith.addf %44, %48 : vector<1x128xf32>
    %c0_19 = arith.constant 0 : index
    %c0_20 = arith.constant 0 : index
    %50 = vector.load %arg16[%c0_19, %c0_20] : memref<1x128xf32, #tpu.memory_space<vmem>>, vector<1x128xf32>
    tpu.vector_store %arg16[%c0_19, %c0_20], %49 {strides = array<i32>} : memref<1x128xf32, #tpu.memory_space<vmem>>, vector<1x128xf32>,
    %c0_21 = arith.constant 0 : index
    %c0_22 = arith.constant 0 : index
    %51 = vector.load %arg17[%c0_21, %c0_22] : memref<1x128xf32, #tpu.memory_space<vmem>>, vector<1x128xf32>
    %c0_23 = arith.constant 0 : index
    %c0_24 = arith.constant 0 : index
    %52 = vector.load %arg4[%c0_23, %c0_24] : memref<6x128xf32, #tpu.memory_space<vmem>>, vector<6x128xf32>
    %c0_25 = arith.constant 0 : index
    %c0_26 = arith.constant 0 : index
    %53 = vector.load %arg7[%c0_25, %c0_26] : memref<6x128xf32, #tpu.memory_space<vmem>>, vector<6x128xf32>
    %54 = arith.subf %52, %53 : vector<6x128xf32>
    %55 = arith.mulf %54, %54 : vector<6x128xf32>
    %cst_27 = arith.constant 0.000000e+00 : f32
    %56 = vector.shape_cast %10 : vector<1x128xi1> to vector<1x128xi1>
    %57 = vector.broadcast %56 : vector<1x128xi1> to vector<6x128xi1>
    %58 = vector.broadcast %cst_27 : f32 to vector<6x128xf32>
    %59 = arith.select %57, %55, %58 : vector<6x128xi1>, vector<6x128xf32>
    %cst_28 = arith.constant dense<0.000000e+00> : vector<128xf32>
    %60 = vector.multi_reduction <add>, %59, %cst_28 [0] : vector<6x128xf32> to vector<128xf32>
    %61 = vector.shape_cast %60 : vector<128xf32> to vector<1x128xf32>
    %c0_29 = arith.constant 0 : index
    %c0_30 = arith.constant 0 : index
    %62 = vector.load %arg5[%c0_29, %c0_30] : memref<10x128xf32, #tpu.memory_space<vmem>>, vector<10x128xf32>
    %c0_31 = arith.constant 0 : index
    %c0_32 = arith.constant 0 : index
    %63 = vector.load %arg8[%c0_31, %c0_32] : memref<10x128xf32, #tpu.memory_space<vmem>>, vector<10x128xf32>
    %64 = arith.subf %62, %63 : vector<10x128xf32>
    %65 = arith.mulf %64, %64 : vector<10x128xf32>
    %cst_33 = arith.constant 0.000000e+00 : f32
    %66 = vector.shape_cast %10 : vector<1x128xi1> to vector<1x128xi1>
    %67 = vector.broadcast %66 : vector<1x128xi1> to vector<10x128xi1>
    %68 = vector.broadcast %cst_33 : f32 to vector<10x128xf32>
    %69 = arith.select %67, %65, %68 : vector<10x128xi1>, vector<10x128xf32>
    %cst_34 = arith.constant dense<0.000000e+00> : vector<128xf32>
    %70 = vector.multi_reduction <add>, %69, %cst_34 [0] : vector<10x128xf32> to vector<128xf32>
    %71 = vector.shape_cast %70 : vector<128xf32> to vector<1x128xf32>
    %72 = arith.addf %61, %71 : vector<1x128xf32>
    %c0_35 = arith.constant 0 : index
    %c0_36 = arith.constant 0 : index
    %73 = vector.load %arg6[%c0_35, %c0_36] : memref<12x128xf32, #tpu.memory_space<vmem>>, vector<12x128xf32>
    %c0_37 = arith.constant 0 : index
    %c0_38 = arith.constant 0 : index
    %74 = vector.load %arg9[%c0_37, %c0_38] : memref<12x128xf32, #tpu.memory_space<vmem>>, vector<12x128xf32>
    %75 = arith.subf %73, %74 : vector<12x128xf32>
    %76 = arith.mulf %75, %75 : vector<12x128xf32>
    %cst_39 = arith.constant 0.000000e+00 : f32
    %77 = vector.shape_cast %10 : vector<1x128xi1> to vector<1x128xi1>
    %78 = vector.broadcast %77 : vector<1x128xi1> to vector<12x128xi1>
    %79 = vector.broadcast %cst_39 : f32 to vector<12x128xf32>
    %80 = arith.select %78, %76, %79 : vector<12x128xi1>, vector<12x128xf32>
    %cst_40 = arith.constant dense<0.000000e+00> : vector<128xf32>
    %81 = vector.multi_reduction <add>, %80, %cst_40 [0] : vector<12x128xf32> to vector<128xf32>
    %82 = vector.shape_cast %81 : vector<128xf32> to vector<1x128xf32>
    %83 = arith.addf %72, %82 : vector<1x128xf32>
    %84 = arith.addf %51, %83 : vector<1x128xf32>
    %c0_41 = arith.constant 0 : index
    %c0_42 = arith.constant 0 : index
    %85 = vector.load %arg17[%c0_41, %c0_42] : memref<1x128xf32, #tpu.memory_space<vmem>>, vector<1x128xf32>
    tpu.vector_store %arg17[%c0_41, %c0_42], %84 {strides = array<i32>} : memref<1x128xf32, #tpu.memory_space<vmem>>, vector<1x128xf32>,
    %c0_43 = arith.constant 0 : index
    %c0_44 = arith.constant 0 : index
    %86 = vector.load %arg18[%c0_43, %c0_44] : memref<1x128xf32, #tpu.memory_space<vmem>>, vector<1x128xf32>
    %c0_45 = arith.constant 0 : index
    %c0_46 = arith.constant 0 : index
    %87 = vector.load %arg10[%c0_45, %c0_46] : memref<12x128xf32, #tpu.memory_space<vmem>>, vector<12x128xf32>
    %88 = arith.subf %73, %87 : vector<12x128xf32>
    %89 = arith.mulf %88, %88 : vector<12x128xf32>
    %cst_47 = arith.constant 0.000000e+00 : f32
    %90 = vector.shape_cast %10 : vector<1x128xi1> to vector<1x128xi1>
    %91 = vector.broadcast %90 : vector<1x128xi1> to vector<12x128xi1>
    %92 = vector.broadcast %cst_47 : f32 to vector<12x128xf32>
    %93 = arith.select %91, %89, %92 : vector<12x128xi1>, vector<12x128xf32>
    %cst_48 = arith.constant dense<0.000000e+00> : vector<128xf32>
    %94 = vector.multi_reduction <add>, %93, %cst_48 [0] : vector<12x128xf32> to vector<128xf32>
    %95 = vector.shape_cast %94 : vector<128xf32> to vector<1x128xf32>
    %96 = arith.addf %86, %95 : vector<1x128xf32>
    %c0_49 = arith.constant 0 : index
    %c0_50 = arith.constant 0 : index
    %97 = vector.load %arg18[%c0_49, %c0_50] : memref<1x128xf32, #tpu.memory_space<vmem>>, vector<1x128xf32>
    tpu.vector_store %arg18[%c0_49, %c0_50], %96 {strides = array<i32>} : memref<1x128xf32, #tpu.memory_space<vmem>>, vector<1x128xf32>,
    %c0_i32_51 = arith.constant 0 : i32
    %98 = arith.cmpi eq, %arg1, %c0_i32_51 : i32
    %99 = arith.extui %98 : i1 to i32
    %c0_i32_52 = arith.constant 0 : i32
    %100 = arith.cmpi ne, %99, %c0_i32_52 : i32
    scf.if %100 {
      %c0_53 = arith.constant 0 : index
      %c0_54 = arith.constant 0 : index
      %101 = vector.load %arg15[%c0_53, %c0_54] : memref<1x128xf32, #tpu.memory_space<vmem>>, vector<1x128xf32>
      %102 = vector.shape_cast %101 : vector<1x128xf32> to vector<1x1x128xf32>
      %cst_55 = arith.constant dense<0.000000e+00> : vector<1xf32>
      %103 = vector.multi_reduction <add>, %102, %cst_55 [1, 2] : vector<1x1x128xf32> to vector<1xf32>
      %104 = vector.shape_cast %103 : vector<1xf32> to vector<1x1x1xf32>
      %105 = vector.extract %104[0, 0, 0] : f32 from vector<1x1x1xf32>
      %106 = vector.broadcast %105 : f32 to vector<1x1x1xf32>
      %107 = vector.shape_cast %106 : vector<1x1x1xf32> to vector<1x1x1xf32>
      %108 = vector.broadcast %107 : vector<1x1x1xf32> to vector<1x8x128xf32>
      %c0_56 = arith.constant 0 : index
      %c0_57 = arith.constant 0 : index
      %c0_58 = arith.constant 0 : index
      %109 = vector.load %arg11[%c0_56, %c0_57, %c0_58] : memref<1x8x128xf32, #tpu.memory_space<vmem>>, vector<1x8x128xf32>
      tpu.vector_store %arg11[%c0_56, %c0_57, %c0_58], %108 {strides = array<i32>} : memref<1x8x128xf32, #tpu.memory_space<vmem>>, vector<1x8x128xf32>,
      %c0_59 = arith.constant 0 : index
      %c0_60 = arith.constant 0 : index
      %110 = vector.load %arg16[%c0_59, %c0_60] : memref<1x128xf32, #tpu.memory_space<vmem>>, vector<1x128xf32>
      %111 = vector.shape_cast %110 : vector<1x128xf32> to vector<1x1x128xf32>
      %cst_61 = arith.constant dense<0.000000e+00> : vector<1xf32>
      %112 = vector.multi_reduction <add>, %111, %cst_61 [1, 2] : vector<1x1x128xf32> to vector<1xf32>
      %113 = vector.shape_cast %112 : vector<1xf32> to vector<1x1x1xf32>
      %114 = vector.extract %113[0, 0, 0] : f32 from vector<1x1x1xf32>
      %115 = vector.broadcast %114 : f32 to vector<1x1x1xf32>
      %116 = vector.shape_cast %115 : vector<1x1x1xf32> to vector<1x1x1xf32>
      %117 = vector.broadcast %116 : vector<1x1x1xf32> to vector<1x8x128xf32>
      %c0_62 = arith.constant 0 : index
      %c0_63 = arith.constant 0 : index
      %c0_64 = arith.constant 0 : index
      %118 = vector.load %arg12[%c0_62, %c0_63, %c0_64] : memref<1x8x128xf32, #tpu.memory_space<vmem>>, vector<1x8x128xf32>
      tpu.vector_store %arg12[%c0_62, %c0_63, %c0_64], %117 {strides = array<i32>} : memref<1x8x128xf32, #tpu.memory_space<vmem>>, vector<1x8x128xf32>,
      %c0_65 = arith.constant 0 : index
      %c0_66 = arith.constant 0 : index
      %119 = vector.load %arg17[%c0_65, %c0_66] : memref<1x128xf32, #tpu.memory_space<vmem>>, vector<1x128xf32>
      %120 = vector.shape_cast %119 : vector<1x128xf32> to vector<1x1x128xf32>
      %cst_67 = arith.constant dense<0.000000e+00> : vector<1xf32>
      %121 = vector.multi_reduction <add>, %120, %cst_67 [1, 2] : vector<1x1x128xf32> to vector<1xf32>
      %122 = vector.shape_cast %121 : vector<1xf32> to vector<1x1x1xf32>
      %123 = vector.extract %122[0, 0, 0] : f32 from vector<1x1x1xf32>
      %124 = vector.broadcast %123 : f32 to vector<1x1x1xf32>
      %125 = vector.shape_cast %124 : vector<1x1x1xf32> to vector<1x1x1xf32>
      %126 = vector.broadcast %125 : vector<1x1x1xf32> to vector<1x8x128xf32>
      %c0_68 = arith.constant 0 : index
      %c0_69 = arith.constant 0 : index
      %c0_70 = arith.constant 0 : index
      %127 = vector.load %arg13[%c0_68, %c0_69, %c0_70] : memref<1x8x128xf32, #tpu.memory_space<vmem>>, vector<1x8x128xf32>
      tpu.vector_store %arg13[%c0_68, %c0_69, %c0_70], %126 {strides = array<i32>} : memref<1x8x128xf32, #tpu.memory_space<vmem>>, vector<1x8x128xf32>,
      %c0_71 = arith.constant 0 : index
      %c0_72 = arith.constant 0 : index
      %128 = vector.load %arg18[%c0_71, %c0_72] : memref<1x128xf32, #tpu.memory_space<vmem>>, vector<1x128xf32>
      %129 = vector.shape_cast %128 : vector<1x128xf32> to vector<1x1x128xf32>
      %cst_73 = arith.constant dense<0.000000e+00> : vector<1xf32>
      %130 = vector.multi_reduction <add>, %129, %cst_73 [1, 2] : vector<1x1x128xf32> to vector<1xf32>
      %131 = vector.shape_cast %130 : vector<1xf32> to vector<1x1x1xf32>
      %132 = vector.extract %131[0, 0, 0] : f32 from vector<1x1x1xf32>
      %133 = vector.broadcast %132 : f32 to vector<1x1x1xf32>
      %134 = vector.shape_cast %133 : vector<1x1x1xf32> to vector<1x1x1xf32>
      %135 = vector.broadcast %134 : vector<1x1x1xf32> to vector<1x8x128xf32>
      %c0_74 = arith.constant 0 : index
      %c0_75 = arith.constant 0 : index
      %c0_76 = arith.constant 0 : index
      %136 = vector.load %arg14[%c0_74, %c0_75, %c0_76] : memref<1x8x128xf32, #tpu.memory_space<vmem>>, vector<1x8x128xf32>
      tpu.vector_store %arg14[%c0_74, %c0_75, %c0_76], %135 {strides = array<i32>} : memref<1x8x128xf32, #tpu.memory_space<vmem>>, vector<1x8x128xf32>,
    } else {
    }
    return
  }
  func.func @transform_0(%arg0: i32, %arg1: i32) -> (i32, i32, i32) {
    %c1_i32 = arith.constant 1 : i32
    %0 = arith.muli %arg0, %c1_i32 : i32
    %1 = arith.addi %0, %arg1 : i32
    %c0_i32 = arith.constant 0 : i32
    %c0_i32_0 = arith.constant 0 : i32
    %c0_i32_1 = arith.constant 0 : i32
    return %c0_i32, %c0_i32_0, %1 : i32, i32, i32
  }
  func.func @transform_1(%arg0: i32, %arg1: i32) -> (i32, i32) {
    %c1_i32 = arith.constant 1 : i32
    %0 = arith.muli %arg0, %c1_i32 : i32
    %1 = arith.addi %0, %arg1 : i32
    %c0_i32 = arith.constant 0 : i32
    %c0_i32_0 = arith.constant 0 : i32
    return %c0_i32, %1 : i32, i32
  }
  func.func @transform_2(%arg0: i32, %arg1: i32) -> (i32, i32) {
    %c1_i32 = arith.constant 1 : i32
    %0 = arith.muli %arg0, %c1_i32 : i32
    %1 = arith.addi %0, %arg1 : i32
    %c0_i32 = arith.constant 0 : i32
    %c0_i32_0 = arith.constant 0 : i32
    return %c0_i32, %1 : i32, i32
  }
  func.func @transform_3(%arg0: i32, %arg1: i32) -> (i32, i32) {
    %c1_i32 = arith.constant 1 : i32
    %0 = arith.muli %arg0, %c1_i32 : i32
    %1 = arith.addi %0, %arg1 : i32
    %c0_i32 = arith.constant 0 : i32
    %c0_i32_0 = arith.constant 0 : i32
    return %c0_i32, %1 : i32, i32
  }
  func.func @transform_4(%arg0: i32, %arg1: i32) -> (i32, i32) {
    %c1_i32 = arith.constant 1 : i32
    %0 = arith.muli %arg0, %c1_i32 : i32
    %1 = arith.addi %0, %arg1 : i32
    %c0_i32 = arith.constant 0 : i32
    %c0_i32_0 = arith.constant 0 : i32
    return %c0_i32, %1 : i32, i32
  }
  func.func @transform_5(%arg0: i32, %arg1: i32) -> (i32, i32) {
    %c1_i32 = arith.constant 1 : i32
    %0 = arith.muli %arg0, %c1_i32 : i32
    %1 = arith.addi %0, %arg1 : i32
    %c0_i32 = arith.constant 0 : i32
    %c0_i32_0 = arith.constant 0 : i32
    return %c0_i32, %1 : i32, i32
  }
  func.func @transform_6(%arg0: i32, %arg1: i32) -> (i32, i32) {
    %c1_i32 = arith.constant 1 : i32
    %0 = arith.muli %arg0, %c1_i32 : i32
    %1 = arith.addi %0, %arg1 : i32
    %c0_i32 = arith.constant 0 : i32
    %c0_i32_0 = arith.constant 0 : i32
    return %c0_i32, %1 : i32, i32
  }
  func.func @transform_7(%arg0: i32, %arg1: i32) -> (i32, i32) {
    %c1_i32 = arith.constant 1 : i32
    %0 = arith.muli %arg0, %c1_i32 : i32
    %1 = arith.addi %0, %arg1 : i32
    %c0_i32 = arith.constant 0 : i32
    %c0_i32_0 = arith.constant 0 : i32
    return %c0_i32, %1 : i32, i32
  }
  func.func @transform_8(%arg0: i32, %arg1: i32) -> (i32, i32) {
    %c1_i32 = arith.constant 1 : i32
    %0 = arith.muli %arg0, %c1_i32 : i32
    %1 = arith.addi %0, %arg1 : i32
    %c0_i32 = arith.constant 0 : i32
    %c0_i32_0 = arith.constant 0 : i32
    return %c0_i32, %1 : i32, i32
  }
  func.func @transform_9(%arg0: i32, %arg1: i32) -> (i32, i32, i32) {
    %c0_i32 = arith.constant 0 : i32
    %c0_i32_0 = arith.constant 0 : i32
    %c0_i32_1 = arith.constant 0 : i32
    return %arg0, %c0_i32, %c0_i32_0 : i32, i32, i32
  }
  func.func @transform_10(%arg0: i32, %arg1: i32) -> (i32, i32, i32) {
    %c0_i32 = arith.constant 0 : i32
    %c0_i32_0 = arith.constant 0 : i32
    %c0_i32_1 = arith.constant 0 : i32
    return %arg0, %c0_i32, %c0_i32_0 : i32, i32, i32
  }
  func.func @transform_11(%arg0: i32, %arg1: i32) -> (i32, i32, i32) {
    %c0_i32 = arith.constant 0 : i32
    %c0_i32_0 = arith.constant 0 : i32
    %c0_i32_1 = arith.constant 0 : i32
    return %arg0, %c0_i32, %c0_i32_0 : i32, i32, i32
  }
  func.func @transform_12(%arg0: i32, %arg1: i32) -> (i32, i32, i32) {
    %c0_i32 = arith.constant 0 : i32
    %c0_i32_0 = arith.constant 0 : i32
    %c0_i32_1 = arith.constant 0 : i32
    return %arg0, %c0_i32, %c0_i32_0 : i32, i32, i32
  }
}

</mosaic_0001>

<bundles_post_ra>
// kernel: tpu_custom_call.1
= control target key start
LH: loop header
LB: loop body
LE: loop exit
PB: predicated region body
PF: predicated region fallthrough
CT: control target
= control target key end

     0   :  { %s2758_s0 = inlined_call_operand.hbm [shape: f32[2,4,240], index: 0, kind: input, shape index: {}]   ;;  %s2759_s1 = inlined_call_operand.hbm [shape: s32[2,240], index: 1, kind: input, shape index: {}]   ;;  %s2760_s2 = inlined_call_operand.hbm [shape: f32[6,240], index: 2, kind: input, shape index: {}]   ;;  %s2761_s3 = inlined_call_operand.hbm [shape: f32[10,240], index: 3, kind: input, shape index: {}]   ;;  %s2762_s4 = inlined_call_operand.hbm [shape: f32[12,240], index: 4, kind: input, shape index: {}]   ;;  %s2763_s5 = inlined_call_operand.hbm [shape: f32[6,240], index: 5, kind: input, shape index: {}]   ;;  %s2764_s6 = inlined_call_operand.hbm [shape: f32[10,240], index: 6, kind: input, shape index: {}]   ;;  %s2765_s7 = inlined_call_operand.hbm [shape: f32[12,240], index: 7, kind: input, shape index: {}]   ;;  %s2766_s8 = inlined_call_operand.hbm [shape: f32[12,240], index: 8, kind: input, shape index: {}]   ;;  %s2767_s9 = inlined_call_operand.hbm [shape: f32[2,8,128], index: 9, kind: output, shape index: {0}]   ;;  %s2768_s10 = inlined_call_operand.hbm [shape: f32[2,8,128], index: 10, kind: output, shape index: {1}]   ;;  %s2769_s11 = inlined_call_operand.hbm [shape: f32[2,8,128], index: 11, kind: output, shape index: {2}]   ;;  %s2770_s12 = inlined_call_operand.hbm [shape: f32[2,8,128], index: 12, kind: output, shape index: {3}]  }
   0x1   :  { %2800 = sst [smem:[#allocation46_spill]] %s2758_s0 }
   0x2   :  { %2801 = sst [smem:[#allocation47_spill]] %s2759_s1 }
   0x3   :  { %2802 = sst [smem:[#allocation48_spill]] %s2760_s2 }
   0x4   :  { %2803 = sst [smem:[#allocation49_spill]] %s2761_s3 }
   0x5   :  { %2804 = sst [smem:[#allocation50_spill]] %s2763_s5 }
   0x6   :  { %2805 = sst [smem:[#allocation51_spill]] %s2767_s9 }
   0x7   :  { %2806 = sst [smem:[#allocation52_spill]] %s2768_s10 }
   0x8   :  { %2807 = sst [smem:[#allocation53_spill]] %s2769_s11 }
   0x9   :  { %2808 = sst [smem:[#allocation54_spill]] %s2770_s12 }
   0xa   :  { %18 = vsyncpa [#allocation7], 0 }
   0xb   :  { %20 = vsyncpa [#allocation7 + $0x1], 0 }
   0xc   :  { %21 = vsyncpa [#allocation10], 0 }
   0xd   :  { %23 = vsyncpa [#allocation10 + $0x1], 0 }
   0xe   :  { %24 = vsyncpa [#allocation13], 0 }
   0xf   :  { %26 = vsyncpa [#allocation13 + $0x1], 0 }
  0x10   :  { %27 = vsyncpa [#allocation16], 0 }
  0x11   :  { %29 = vsyncpa [#allocation16 + $0x1], 0 }
  0x12   :  { %30 = vsyncpa [#allocation19], 0 }
  0x13   :  { %32 = vsyncpa [#allocation19 + $0x1], 0 }
  0x14   :  { %33 = vsyncpa [#allocation8], 0 }
  0x15   :  { %35 = vsyncpa [#allocation8 + $0x1], 0 }
  0x16   :  { %36 = vsyncpa [#allocation23], 0 }
  0x17   :  { %38 = vsyncpa [#allocation23 + $0x1], 0 }
  0x18   :  { %39 = vsyncpa [#allocation26], 0 }
  0x19   :  { %41 = vsyncpa [#allocation26 + $0x1], 0  ;;  %s2207_s21 = smov 0   ;;  %s2209_s22 = smov 0  }
  0x1a   :  { %s2211_s23 = smov 0   ;;  %s2213_s24 = smov 0  }
  0x1b   :  { %s2215_s25 = smov 0   ;;  %s2217_s26 = smov 0  }
  0x1c LB: > { %2809 = sst [smem:[#allocation35_spill]] %s2100_s21  ;;  %s2238_s27 = sadd.s32 4294967295, %s2120_s26   ;;  %s2120_s26 = sphi %s2217_s26, %s47_s26   ;;  %s2116_s25 = sphi %s2215_s25, %s2861_s25   ;;  %s2112_s24 = sphi %s2213_s24, %s2860_s24   ;;  %s2108_s23 = sphi %s2211_s23, %s2858_s23   ;;  %s2104_s22 = sphi %s2209_s22, %s2857_s22   ;;  %s2100_s21 = sphi %s2207_s21, %s2856_s21  }
  0x1d   : > { %2810 = sst [smem:[#allocation36_spill]] %s2104_s22  ;;  %s2772_s28 = sadd.s32 4294967294, %s2120_s26  }
  0x1e   : > { %2811 = sst [smem:[#allocation37_spill]] %s2108_s23  ;;  %s59_s29 = sadd.s32 1, %s2116_s25 }
  0x1f   : > { %2812 = sst [smem:[#allocation38_spill]] %s2112_s24  ;;  %s68_s30 = sadd.s32 1, %s2108_s23 }
  0x20   : > { %2813 = sst [smem:[#allocation39_spill]] %s2120_s26  ;;  %p61_p0 = scmp.ge.s32.totalorder %s59_s29, 2 }
  0x21   : > { %2814 = sst [smem:[#allocation40_spill]] %s2238_s27  ;;  %p75_p1 = scmp.ne.s32.totalorder %s2108_s23, %s2104_s22 }
  0x22   : > { %p76_p2 = scmp.eq.s32.totalorder %s2120_s26, 0  ;;  %p81_p3 = scmp.ne.s32.totalorder %s2104_s22, %s2100_s21 }
  0x23   : > { %s2863_s29 = smov (%p61_p0, %s59_s29), 0  ;;  %p82_p5 = scmp.eq.s32.totalorder %s2238_s27, 0 }
  0x24   : > { %2815 = sst [smem:[#allocation41_spill]] %s2863_s29  ;;  %p2250_p4 = por %p76_p2, %p75_p1 }
  0x25   : > { %s65_s14 = ssub.s32 %s2116_s25, %s2863_s29  ;;  %p329_p6 = scmp.eq.s32.totalorder %s2238_s27, 1 }
  0x26   : > { %p66_p7 = scmp.eq.s32.totalorder %s65_s14, 0  ;;  %p2258_p8 = por %p82_p5, %p81_p3 }
  0x27   : > { %p2262_p9 = por %p329_p6, %p75_p1  ;;  %p335_p10 = scmp.eq.s32.totalorder %s2772_s28, 1 }
  0x28   : > { %s2817_s15 = scalar_select %p2258_p8, 1, 0 }
  0x29   : > { %s2819_s16 = scalar_select %p2262_p9, 1, 0 }
  0x2a   : > { %2818 = sst [smem:[#allocation42_spill]] %s2817_s15  ;;  %p2271_p11 = por %p335_p10, %p81_p3 }
  0x2b   : > { %2820 = sst [smem:[#allocation43_spill]] %s2819_s16  ;;  %p1499_p12 = scmp.ge.s32.totalorder %s2120_s26, 2 }
  0x2c   : > { %s2269_s17 = scalar_select %p66_p7, %s2108_s23, %s68_s30  }
  0x2d   : > { %s2822_s18 = scalar_select %p2271_p11, 1, 0 }
  0x2e   : > { %2821 = sst [smem:[#allocation44_spill]] %s2269_s17  ;;  %p1621_p13 = scmp.lt.s32.totalorder %s2120_s26, 2 }
  0x2f   : > { %2823 = sst [smem:[#allocation45_spill]] %s2822_s18  ;;  %s2278_s19 = sand.u32 1, %s2108_s23  }
  0x30   : > { %s2281_s20 = sand.u32 1, %s2120_s26   ;;  %s1502_s14 = sshll.u32 %s2278_s19, 1 }
  0x31   : > { %p2286_p0 = pnand %p1621_p13, %p2250_p4  ;;  %s1503_s30 = sshll.u32 %s2116_s25, 5 }
  0x32   : > { %s2825_s1 = sld [smem:[#allocation47_spill]]  ;;  %s458_s21 = scalar_lea.vmem [#allocation9], %s1502_s14 }
  0x33   : > { %s466_s12 = sshll.u32 %s458_s21, 4  ;;  %s2295_s23 = sshll.u32 %s2116_s25, 7  ;;  %s467_s12 = int_to_ptr.vmem [resolvable:$true] %s466_s12 }
  0x34   : > { %s2782_s11 = scalar_lea.sflag [#allocation10], %s2281_s20  ;;  %p2300_p1 = pneg %p2286_p0 }
  0x35   : > { %s1699_s13 = scalar_lea.vmem %s467_s12, 32  ;;  %s2122_s9 = smov [#allocation9]  }
  0x36   : > { %p1700_p2 = scmp.ne.s32.totalorder %s467_s12, %s1699_s13  ;;  %s1704_s28 = sshll.u32 %s2122_s9, 4  ;;  %s1705_s28 = int_to_ptr.vmem [resolvable:$false] %s1704_s28 }
  0x37   : > { %s1706_s17 = scalar_lea.vmem %s1705_s28, 64  ;;  %p1707_p5 = scmp.lt.s32.totalorder %s467_s12, %s1705_s28 }
  0x38   : > { %s464_s18 = scalar_lea.hbm %s2825_s1, %s1503_s30  ;;  %p1702_p3 = pnand %p1700_p2, %p2300_p1 }
  0x39   : > { %p1708_p6 = scmp.lt.s32.totalorder %s1706_s17, %s1699_s13 }
  0x3a   : > { %p1703_p4 = pneg %p1702_p3 }
  0x3b   : > { %p1709_p7 = por %p1708_p6, %p1707_p5 }
  0x3d   : > { %p1710_p10 = pnand %p1709_p7, %p1703_p4 }
  0x3f   : > { %1713 = shalt.err (!%p1710_p10)
}
  0x40   : > { %1586 = dma.hbm_to_vmem [thread:$0]  (!%p2286_p0), %s464_s18, 32, %s467_s12, %s2782_s11  }
  0x41   : > { %s2311_s21 = sshll.u32 %s2278_s19, 4  ;;  %p1518_p13 = scmp.ge.s32.totalorder %s2120_s26, 1 }
  0x42   : > { %p614_p2 = scmp.lt.s32.totalorder %s2120_s26, 3  ;;  %s2828_s3 = sld [smem:[#allocation49_spill]] }
  0x43   : > { %s496_s28 = scalar_lea.vmem [#allocation12], %s2311_s21  ;;  %s2789_s1 = scalar_lea.sflag [#allocation13], %s2281_s20 }
  0x44   : > { %p2315_p3 = pnand %p1518_p13, %p614_p2  ;;  %s503_s17 = sshll.u32 %s496_s28, 4  ;;  %s504_s17 = int_to_ptr.vmem [resolvable:$true] %s503_s17 }
  0x45   : > { %s1727_s16 = scalar_lea.vmem %s504_s17, 256  ;;  %s2123_s12 = smov [#allocation12]  }
  0x46   : > { %p1728_p4 = scmp.ne.s32.totalorder %s504_s17, %s1727_s16  ;;  %s1732_s18 = sshll.u32 %s2123_s12, 4  ;;  %s1733_s18 = int_to_ptr.vmem [resolvable:$false] %s1732_s18 }
  0x47   : > { %s1734_s11 = scalar_lea.vmem %s1733_s18, 512  ;;  %p1735_p7 = scmp.lt.s32.totalorder %s504_s17, %s1733_s18 }
  0x48   : > { %s502_s13 = scalar_lea.hbm %s2828_s3, %s2295_s23  ;;  %p1730_p5 = pnand %p1728_p4, %p2300_p1 }
  0x49   : > { %p1736_p10 = scmp.lt.s32.totalorder %s1734_s11, %s1727_s16 }
  0x4a   : > { %p1731_p6 = pneg %p1730_p5 }
  0x4b   : > { %p1737_p13 = por %p1736_p10, %p1735_p7 }
  0x4d   : > { %p1738_p2 = pnand %p1737_p13, %p1731_p6 }
  0x4f   : > { %1741 = shalt.err (!%p1738_p2)
}
  0x50   : > { %s2790_s14 = smov 256   ;;  %s2792_s30 = smov 128  }
  0x51   : > { %s2796_s28 = smov 8   ;;  %s2335_s12 = sshll.u32 %s2278_s19, 3 }
  0x52   : > { %1592 = dma.hbm_to_vmem [thread:$0]  (!%p2286_p0), %s502_s13, 256, %s504_s17, %s2789_s1, %s2790_s14, %s2792_s30, %s2796_s28  }
  0x53   : > { %s437_s11 = scalar_lea.vmem [#allocation6], %s2335_s12  ;;  %s2829_s5 = sld [smem:[#allocation50_spill]] }
  0x54   : > { %s444_s16 = sshll.u32 %s437_s11, 4  ;;  %s538_s24 = scalar_lea.vmem [#allocation15], %s2335_s12  ;;  %s2342_s16 = int_to_ptr.vmem [resolvable:$true] %s444_s16 }
  0x55   : > { %s546_s27 = sshll.u32 %s538_s24, 4  ;;  %s2794_s15 = scalar_lea.sflag [#allocation16], %s2281_s20  ;;  %s547_s27 = int_to_ptr.vmem [resolvable:$true] %s546_s27 }
  0x56   : > { %s1755_s22 = scalar_lea.vmem %s547_s27, 128  ;;  %s2127_s13 = smov [#allocation15]  }
  0x57   : > { %p1756_p4 = scmp.ne.s32.totalorder %s547_s27, %s1755_s22  ;;  %s1760_s17 = sshll.u32 %s2127_s13, 4  ;;  %s1761_s17 = int_to_ptr.vmem [resolvable:$false] %s1760_s17 }
  0x58   : > { %s1762_s1 = scalar_lea.vmem %s1761_s17, 256  ;;  %p1763_p7 = scmp.lt.s32.totalorder %s547_s27, %s1761_s17 }
  0x59   : > { %s544_s26 = scalar_lea.hbm %s2829_s5, %s2295_s23  ;;  %p1758_p5 = pnand %p1756_p4, %p2300_p1 }
  0x5a   : > { %p1764_p10 = scmp.lt.s32.totalorder %s1762_s1, %s1755_s22 }
  0x5b   : > { %p1759_p6 = pneg %p1758_p5 }
  0x5c   : > { %p1765_p13 = por %p1764_p10, %p1763_p7 }
  0x5e   : > { %p1766_p2 = pnand %p1765_p13, %p1759_p6 }
  0x60   : > { %1769 = shalt.err (!%p1766_p2)
}
  0x61   : > { %1598 = dma.hbm_to_vmem [thread:$0]  (!%p2286_p0), %s544_s26, 128, %s547_s27, %s2794_s15  }
  0x62   : > { %s584_s11 = scalar_lea.hbm %s2765_s7, %s2295_s23  ;;  %s578_s18 = scalar_lea.vmem [#allocation18], %s2311_s21 }
  0x63   : > { %s585_s13 = sshll.u32 %s578_s18, 4  ;;  %s2795_s1 = scalar_lea.sflag [#allocation19], %s2281_s20  ;;  %s586_s13 = int_to_ptr.vmem [resolvable:$true] %s585_s13 }
  0x64   : > { %s1783_s22 = scalar_lea.vmem %s586_s13, 256  ;;  %s2128_s17 = smov [#allocation18]  }
  0x65   : > { %p1784_p4 = scmp.ne.s32.totalorder %s586_s13, %s1783_s22  ;;  %s1788_s14 = sshll.u32 %s2128_s17, 4  ;;  %s1789_s14 = int_to_ptr.vmem [resolvable:$false] %s1788_s14 }
  0x66   : > { %s1790_s30 = scalar_lea.vmem %s1789_s14, 512  ;;  %p1791_p7 = scmp.lt.s32.totalorder %s586_s13, %s1789_s14 }
  0x67   : > { %p1786_p5 = pnand %p1784_p4, %p2300_p1  ;;  %p1792_p10 = scmp.lt.s32.totalorder %s1790_s30, %s1783_s22 }
  0x69   : > { %p1787_p6 = pneg %p1786_p5  ;;  %p1793_p13 = por %p1792_p10, %p1791_p7 }
  0x6b   : > { %p1794_p2 = pnand %p1793_p13, %p1787_p6 }
  0x6d   : > { %1797 = shalt.err (!%p1794_p2)
}
  0x6e   : > { %s2830_s26 = smov 128   ;;  %s2831_s27 = smov 256  }
  0x6f   : > { %1604 = dma.hbm_to_vmem [thread:$0]  (!%p2286_p0), %s584_s11, 256, %s586_s13, %s2795_s1, %s2831_s27, %s2830_s26, %s2796_s28  }
  0x70   : > { %s1501_s3 = sshll.u32 %s2116_s25, 6  ;;  %s2832_s0 = sld [smem:[#allocation46_spill]] }
  0x71   : > { %s434_s18 = scalar_lea.sflag [#allocation7], %s2278_s19  ;;  %s1811_s22 = scalar_lea.vmem %s2342_s16, 128 }
  0x72   : > { %p1812_p4 = scmp.ne.s32.totalorder %s2342_s16, %s1811_s22  ;;  %s2129_s17 = smov [#allocation6]  }
  0x73   : > { %s1816_s15 = sshll.u32 %s2129_s17, 4  ;;  %s1817_s15 = int_to_ptr.vmem [resolvable:$false] %s1816_s15 }
  0x74   : > { %p1814_p5 = pnand %p1812_p4, %p2300_p1  ;;  %s1818_s5 = scalar_lea.vmem %s1817_s15, 256 }
  0x75   : > { %p1819_p7 = scmp.lt.s32.totalorder %s2342_s16, %s1817_s15  ;;  %p1820_p10 = scmp.lt.s32.totalorder %s1818_s5, %s1811_s22 }
  0x76   : > { %s443_s24 = scalar_lea.hbm %s2832_s0, %s1501_s3  ;;  %p1815_p6 = pneg %p1814_p5 }
  0x77   : > { %p1821_p13 = por %p1820_p10, %p1819_p7 }
  0x79   : > { %p1822_p2 = pnand %p1821_p13, %p1815_p6 }
  0x7b   : > { %1825 = shalt.err (!%p1822_p2)
}
  0x7c   : > { %s2130_s11 = smov 64   ;;  %s2131_s19 = smov 4  }
  0x7d   : > { %1583 = dma.hbm_to_vmem [thread:$0]  (!%p2286_p0), %s443_s24, 128, %s2342_s16, %s434_s18, %s2830_s26, %s2130_s11, %s2131_s19  }
  0x7e   : > { %s2833_s2 = sld [smem:[#allocation48_spill]]  ;;  %s477_s15 = scalar_lea.vmem [#allocation11], %s2335_s12 }
  0x7f   : > { %s485_s5 = sshll.u32 %s477_s15, 4  ;;  %s523_s17 = scalar_lea.hbm %s2762_s4, %s2295_s23  ;;  %s486_s5 = int_to_ptr.vmem [resolvable:$true] %s485_s5 }
  0x80   : > { %s1839_s1 = scalar_lea.vmem %s486_s5, 128  ;;  %s2132_s28 = smov [#allocation11]  }
  0x81   : > { %p1840_p4 = scmp.ne.s32.totalorder %s486_s5, %s1839_s1  ;;  %s1844_s0 = sshll.u32 %s2132_s28, 4  ;;  %s1845_s0 = int_to_ptr.vmem [resolvable:$false] %s1844_s0 }
  0x82   : > { %s1846_s16 = scalar_lea.vmem %s1845_s0, 256  ;;  %p1847_p7 = scmp.lt.s32.totalorder %s486_s5, %s1845_s0 }
  0x83   : > { %p1842_p5 = pnand %p1840_p4, %p2300_p1  ;;  %p1848_p10 = scmp.lt.s32.totalorder %s1846_s16, %s1839_s1 }
  0x84   : > { %s483_s14 = scalar_lea.hbm %s2833_s2, %s2295_s23 }
  0x85   : > { %p1843_p6 = pneg %p1842_p5  ;;  %p1849_p13 = por %p1848_p10, %p1847_p7 }
  0x87   : > { %p1850_p2 = pnand %p1849_p13, %p1843_p6 }
  0x89   : > { %1853 = shalt.err (!%p1850_p2)
}
  0x8a   : > { %s2834_s12 = scalar_lea.sflag [#allocation10], %s2281_s20  ;;  %s517_s24 = scalar_lea.vmem [#allocation14], %s2311_s21 }
  0x8b   : > { %1589 = dma.hbm_to_vmem [thread:$0]  (!%p2286_p0), %s483_s14, 128, %s486_s5, %s2834_s12  }
  0x8c   : > { %s524_s18 = sshll.u32 %s517_s24, 4  ;;  %s563_s19 = scalar_lea.hbm %s2764_s6, %s2295_s23  ;;  %s525_s18 = int_to_ptr.vmem [resolvable:$true] %s524_s18 }
  0x8d   : > { %s1867_s0 = scalar_lea.vmem %s525_s18, 256  ;;  %s2133_s1 = smov [#allocation14]  }
  0x8e   : > { %p1868_p4 = scmp.ne.s32.totalorder %s525_s18, %s1867_s0  ;;  %s1872_s13 = sshll.u32 %s2133_s1, 4  ;;  %s1873_s13 = int_to_ptr.vmem [resolvable:$false] %s1872_s13 }
  0x8f   : > { %s1874_s3 = scalar_lea.vmem %s1873_s13, 512  ;;  %p1875_p7 = scmp.lt.s32.totalorder %s525_s18, %s1873_s13 }
  0x90   : > { %p1870_p5 = pnand %p1868_p4, %p2300_p1  ;;  %p1876_p10 = scmp.lt.s32.totalorder %s1874_s3, %s1867_s0 }
  0x92   : > { %p1871_p6 = pneg %p1870_p5  ;;  %p1877_p13 = por %p1876_p10, %p1875_p7 }
  0x94   : > { %p1878_p2 = pnand %p1877_p13, %p1871_p6 }
  0x96   : > { %1881 = shalt.err (!%p1878_p2)
}
  0x97   : > { %s2835_s14 = smov 8   ;;  %s2836_s15 = scalar_lea.sflag [#allocation13], %s2281_s20 }
  0x98   : > { %1595 = dma.hbm_to_vmem [thread:$0]  (!%p2286_p0), %s523_s17, 256, %s525_s18, %s2836_s15, %s2831_s27, %s2830_s26, %s2835_s14  }
  0x99   : > { %s557_s22 = scalar_lea.vmem [#allocation17], %s2311_s21  ;;  %s605_s11 = scalar_lea.hbm %s2766_s8, %s2295_s23 }
  0x9a   : > { %s564_s16 = sshll.u32 %s557_s22, 4  ;;  %s2134_s0 = smov [#allocation17]   ;;  %s565_s16 = int_to_ptr.vmem [resolvable:$true] %s564_s16 }
  0x9b   : > { %s1895_s28 = scalar_lea.vmem %s565_s16, 256  ;;  %s1900_s1 = sshll.u32 %s2134_s0, 4  ;;  %s1901_s1 = int_to_ptr.vmem [resolvable:$false] %s1900_s1 }
  0x9c   : > { %p1896_p4 = scmp.ne.s32.totalorder %s565_s16, %s1895_s28  ;;  %s1902_s13 = scalar_lea.vmem %s1901_s1, 512 }
  0x9d   : > { %p1903_p7 = scmp.lt.s32.totalorder %s565_s16, %s1901_s1  ;;  %p1904_p10 = scmp.lt.s32.totalorder %s1902_s13, %s1895_s28 }
  0x9e   : > { %p1898_p5 = pnand %p1896_p4, %p2300_p1 }
  0x9f   : > { %p1905_p13 = por %p1904_p10, %p1903_p7 }
  0xa0   : > { %p1899_p6 = pneg %p1898_p5 }
  0xa2   : > { %p1906_p2 = pnand %p1905_p13, %p1899_p6 }
  0xa4   : > { %1909 = shalt.err (!%p1906_p2)
}
  0xa5   : > { %s2837_s17 = scalar_lea.sflag [#allocation16], %s2281_s20  ;;  %s599_s15 = scalar_lea.vmem [#allocation20], %s2311_s21 }
  0xa6   : > { %1601 = dma.hbm_to_vmem [thread:$0]  (!%p2286_p0), %s563_s19, 256, %s565_s16, %s2837_s17, %s2831_s27, %s2830_s26, %s2835_s14  }
  0xa7   : > { %s606_s5 = sshll.u32 %s599_s15, 4  ;;  %s2135_s22 = smov [#allocation20]   ;;  %s607_s5 = int_to_ptr.vmem [resolvable:$true] %s606_s5 }
  0xa8   : > { %s1923_s30 = scalar_lea.vmem %s607_s5, 256  ;;  %s1928_s12 = sshll.u32 %s2135_s22, 4  ;;  %s1929_s12 = int_to_ptr.vmem [resolvable:$false] %s1928_s12 }
  0xa9   : > { %p1924_p4 = scmp.ne.s32.totalorder %s607_s5, %s1923_s30  ;;  %s1930_s24 = scalar_lea.vmem %s1929_s12, 512 }
  0xaa   : > { %p1931_p7 = scmp.lt.s32.totalorder %s607_s5, %s1929_s12  ;;  %p1932_p10 = scmp.lt.s32.totalorder %s1930_s24, %s1923_s30 }
  0xab   : > { %p1926_p5 = pnand %p1924_p4, %p2300_p1 }
  0xac   : > { %p1933_p13 = por %p1932_p10, %p1931_p7 }
  0xad   : > { %p1927_p6 = pneg %p1926_p5 }
  0xaf   : > { %p1934_p2 = pnand %p1933_p13, %p1927_p6 }
  0xb1   : > { %1937 = shalt.err (!%p1934_p2)
}
  0xb2   : > { %s2838_s21 = scalar_lea.sflag [#allocation19], %s2281_s20  ;;  %618 = sbr.rel (%p2315_p3) target bundleno = 595 (0x253), region = 56 }
  0xb3   : > { %1607 = dma.hbm_to_vmem [thread:$0]  (!%p2286_p0), %s605_s11, 256, %s607_s5, %s2838_s21, %s2831_s27, %s2830_s26, %s2835_s14  }
  0xb4   : > { %s2839_s16 = sld [smem:[#allocation36_spill]] (!%p2315_p3) }
  0xba   : > { %s2452_s0 = sand.u32 1, %s2839_s16  }
  0xbb   : > { %s2455_s29 = sshll.u32 %s2452_s0, 3  ;;  %s621_s1 = scalar_lea.sflag [#allocation7], %s2452_s0 }
  0xbc   : > { %s624_s20 = scalar_lea.vmem [#allocation6], %s2455_s29 }
  0xbd   : > { %2067 = dma.done.wait (%p2258_p8), %s621_s1, 128  }
  0xbe   : > { %2069 = vsyncadd (%p2258_p8), %s621_s1, 4294967168  ;;  %s2841_s23 = sld [smem:[#allocation40_spill]]  ;;  %s1520_s26 = sshll.u32 %s2452_s0, 1 }
  0xbf   : > { %s2468_s14 = scalar_lea.vmem [#allocation9], %s1520_s26 }
  0xc4   : > { %s2464_s9 = sand.u32 1, %s2841_s23  }
  0xc5   : > { %s630_s27 = scalar_lea.sflag [#allocation10], %s2464_s9 }
  0xc6   : > { %2071 = dma.done.wait (%p2258_p8), %s630_s27, 160  }
  0xc7   : > { %2073 = vsyncadd (%p2258_p8), %s630_s27, 4294967136  ;;  %s2475_s11 = sshll.u32 %s2452_s0, 4  ;;  %s642_s13 = scalar_lea.vmem [#allocation11], %s2455_s29 }
  0xc8   : > { %s648_s17 = scalar_lea.sflag [#allocation13], %s2464_s9  ;;  %s651_s18 = scalar_lea.vmem [#allocation12], %s2475_s11 }
  0xc9   : > { %2075 = dma.done.wait (%p2258_p8), %s648_s17, 512  }
  0xca   : > { %2077 = vsyncadd (%p2258_p8), %s648_s17, 4294966784  ;;  %s660_s3 = scalar_lea.vmem [#allocation14], %s2475_s11  ;;  %s666_s15 = scalar_lea.sflag [#allocation16], %s2464_s9 }
  0xcb   : > { %s669_s5 = scalar_lea.vmem [#allocation15], %s2455_s29 }
  0xcc   : > { %2079 = dma.done.wait (%p2258_p8), %s666_s15, 384  }
  0xcd   : > { %2081 = vsyncadd (%p2258_p8), %s666_s15, 4294966912  ;;  %s678_s30 = scalar_lea.vmem [#allocation17], %s2475_s11  ;;  %s684_s22 = scalar_lea.sflag [#allocation19], %s2464_s9 }
  0xce   : > { %s687_s12 = scalar_lea.vmem [#allocation18], %s2475_s11 }
  0xcf   : > { %2083 = dma.done.wait (%p2258_p8), %s684_s22, 512  }
  0xd0   : > { %2085 = vsyncadd (%p2258_p8), %s684_s22, 4294966784  ;;  %s2842_s24 = sld [smem:[#allocation38_spill]]  ;;  %v809_v0 = vlaneseq  ;;  %v2136_v1 = vmov 0.0   ;;  %v948_v5 = vld [vmem:[%s642_s13] sm:$0x3f]  ;;  %v961_v7 = vld [vmem:[%s651_s18] sm:$0xff] }
  0xd1   : > { %807 = vst [vmem:[#allocation4] sm:$0x1] %v2136_v1  ;;  %805 = vst [vmem:[#allocation2] sm:$0x1] %v2136_v1  ;;  %v949_v6 = vld [vmem:[%s669_s5] sm:$0x3f] }
  0xd2   : > { %806 = vst [vmem:[#allocation3] sm:$0x1] %v2136_v1  ;;  %808 = vst [vmem:[#allocation5] sm:$0x1] %v2136_v1  ;;  %v810_v2 = vand.u32 127, %v809_v0  ;;  %vm819_vm0 = vcmask 1043456   ;;  %v950_v10 = vsub.f32 %v948_v5, %v949_v6 }
  0xd3   : > { %v2137_v8 = vmov 1966171168   ;;  %vm925_vm1 = vcmask 1041408   ;;  %v962_v11 = vld [vmem:[%s651_s18 + $0x8] sm:$0x3]  ;;  %v963_v12 = vld [vmem:[%s678_s30] sm:$0xff] }
  0xd4   : > { %v2510_v9 = vunpack.c.l.s4 %v2137_v8  ;;  %vm953_vm2 = vcmask 1045504   ;;  %v964_v13 = vld [vmem:[%s678_s30 + $0x8] sm:$0x3]  ;;  %v965_v14 = vsub.f32 %v961_v7, %v963_v12  ;;  %v980_v15 = vld [vmem:[%s660_s3] sm:$0xff]  ;;  %v981_v16 = vld [vmem:[%s660_s3 + $0x8] sm:$0xf]  ;;  %v951_v17 = vmul.f32 %v950_v10, %v950_v10 }
  0xd5   : > { %v966_v18 = vsub.f32 %v962_v11, %v964_v13  ;;  %v982_v19 = vld [vmem:[%s687_s12] sm:$0xff]  ;;  %v983_v20 = vld [vmem:[%s687_s12 + $0x8] sm:$0xf]  ;;  %v2523_v21 = vshrl.u32 %v809_v0, 7  ;;  %s696_s19 = scalar_lea.vmem [#allocation20], %s2475_s11  ;;  %vm1024_vm6 = vcmask 1040384  }
  0xd6   : > { %s2499_s21 = sshll.u32 %s2842_s24, 7  ;;  %v967_v22 = vmul.f32 %v965_v14, %v965_v14  ;;  %v984_v23 = vsub.f32 %v980_v15, %v982_v19  ;;  %v985_v24 = vsub.f32 %v981_v16, %v983_v20  ;;  %v1002_v25 = vld [vmem:[%s696_s19] sm:$0xff]  ;;  %v1003_v26 = vld [vmem:[%s696_s19 + $0x8] sm:$0xf]  ;;  %v864_v27 = vunpack.c.0.s8 %v2510_v9  ;;  %v818_v7 = vld [vmem:[%s2468_s14] sm:$0x3] }
  0xd7   : > { %v813_v3 = vstv %s2499_s21  ;;  %v968_v29 = vmul.f32 %v966_v18, %v966_v18  ;;  %v1004_v30 = vsub.f32 %v980_v15, %v1002_v25  ;;  %v1005_v31 = vsub.f32 %v981_v16, %v1003_v26  ;;  %v2531_v32 = vld [vmem:[%s624_s20] sm:$0xf]  ;;  %v2540_v41 = vld [vmem:[%s624_s20 + $0x4] sm:$0xf]  ;;  %s2799_s10 = scalar_lea.vmem [#allocation24], %s2455_s29  ;;  %s770_s28 = scalar_lea.vmem [#allocation21], %s2455_s29 }
  0xd8   : > { %v2506_v4 = vadd.s32 %v813_v3, %v810_v2  ;;  %v986_v35 = vmul.f32 %v984_v23, %v984_v23  ;;  %v987_v36 = vmul.f32 %v985_v24, %v985_v24  ;;  %v820_v45 = vsel %vm819_vm0, %v2531_v32, -inf  ;;  %s1131_s16 = sshll.u32 %s2799_s10, 4  ;;  %s1105_s1 = sshll.u32 %s770_s28, 4  ;;  %s2598_s16 = int_to_ptr.vmem [resolvable:$true] %s1131_s16  ;;  %s2613_s1 = int_to_ptr.vmem [resolvable:$true] %s1105_s1 }
  0xd9   : > { %v1006_v39 = vmul.f32 %v1004_v30, %v1004_v30  ;;  %v1007_v40 = vmul.f32 %v1005_v31, %v1005_v31  ;;  %v821_v52 = vrot.slane %v820_v45, 4  ;;  %v827_v53 = vsel %vm819_vm0, %v2540_v41, -inf  ;;  %s2798_s23 = scalar_lea.vmem [#allocation25], %s2455_s29  ;;  %s777_s27 = scalar_lea.vmem [#allocation22], %s2455_s29 }
  0xda   : > { %vm815_vm3 = vcmp.lt.s32.totalorder %v2506_v4, 240  ;;  %v828_v57 = vrot.slane %v827_v53, 4  ;;  %v867_v9 = vsub.s32 %v864_v27, %v2523_v21  ;;  %vm914_vm4 = vcmp.gt.s32.totalorder %v818_v7, 0  ;;  %s1144_s26 = sshll.u32 %s2798_s23, 4  ;;  %s1118_s14 = sshll.u32 %s777_s27, 4  ;;  %s2615_s26 = int_to_ptr.vmem [resolvable:$true] %s1144_s26  ;;  %s2623_s14 = int_to_ptr.vmem [resolvable:$true] %s1118_s14 }
  0xdb   : > { %v952_v28 = vsel %vm815_vm3, %v951_v17, 0.0  ;;  %v969_v34 = vsel %vm815_vm3, %v967_v22, 0.0  ;;  %v970_v38 = vsel %vm815_vm3, %v968_v29, 0.0  ;;  %v988_v43 = vsel %vm815_vm3, %v986_v35, 0.0  ;;  %vm2561_vm5 = vmand %vm914_vm4, %vm815_vm3  ;;  %s2846_s17 = sld [smem:[#allocation51_spill]]  ;;  %s1077_s12 = scalar_lea.sflag [#allocation8], %s2452_s0 }
  0xdc   : > { %v954_v33 = vsel %vm953_vm2, %v952_v28, 0.0  ;;  %v971_v42 = vsel %vm925_vm1, %v970_v38, 0.0  ;;  %v989_v44 = vsel %vm815_vm3, %v987_v36, 0.0  ;;  %v1008_v49 = vsel %vm815_vm3, %v1006_v39, 0.0  ;;  %v947_v38 = vld [vmem:[#allocation4] sm:$0x1] }
  0xdd   : > { %v955_v37 = vrot.slane %v954_v33, 4  ;;  %v972_v47 = vadd.f32 %v971_v42, %v969_v34  ;;  %v990_v48 = vsel %vm819_vm0, %v989_v44, 0.0  ;;  %v1009_v51 = vsel %vm815_vm3, %v1007_v40, 0.0  ;;  %v1001_v34 = vld [vmem:[#allocation5] sm:$0x1]  ;;  %s2847_s30 = sld [smem:[#allocation52_spill]] }
  0xde   : > { %v991_v50 = vadd.f32 %v990_v48, %v988_v43  ;;  %v1010_v56 = vsel %vm819_vm0, %v1009_v51, 0.0  ;;  %v822_v60 = vmax.f32 %v820_v45, %v821_v52  ;;  %v829_v63 = vmax.f32 %v827_v53, %v828_v57  ;;  %v935_v57 = vld [vmem:[#allocation3] sm:$0x1]  ;;  %s1938_s24 = scalar_lea.vmem %s2613_s1, 128  ;;  %s2138_s19 = smov [#allocation21]  }
  0xdf   : > { %v956_v46 = vadd.f32 %v955_v37, %v954_v33  ;;  %v973_v55 = vrot.slane %v972_v47, 4  ;;  %v1011_v59 = vadd.f32 %v1010_v56, %v1008_v49  ;;  %v868_v22 = vrot.slane %v818_v7, %v867_v9  ;;  %p1939_p8 = scmp.ne.s32.totalorder %s2613_s1, %s1938_s24  ;;  %s1942_s11 = sshll.u32 %s2138_s19, 4  ;;  %s1943_s11 = int_to_ptr.vmem [resolvable:$false] %s1942_s11 }
  0xe0   : > { %v992_v58 = vrot.slane %v991_v50, 4  ;;  %v823_v3 = vrot.slane %v822_v60, 2  ;;  %v830_v8 = vrot.slane %v829_v63, 2  ;;  %v1535_v27 = vsel %vm2561_vm5, 1.0, %v2136_v1  ;;  %s1944_s13 = scalar_lea.vmem %s1943_s11, 256  ;;  %p1945_p3 = scmp.lt.s32.totalorder %s2613_s1, %s1943_s11 }
  0xe1   : > { %v957_v54 = vrot.slane %v956_v46, 2  ;;  %v974_v62 = vadd.f32 %v973_v55, %v972_v47  ;;  %v1012_v2 = vrot.slane %v1011_v59, 4  ;;  %v869_v36 = vcombine.high %v868_v22, %v868_v22  ;;  %s2611_s18 = scalar_lea.hbm %s2846_s17, %s2499_s21  ;;  %p1940_p0 = pnand %p1939_p8, %p2262_p9 }
  0xe2   : > { %v993_v0 = vadd.f32 %v992_v58, %v991_v50  ;;  %v824_v12 = vmax.f32 %v822_v60, %v823_v3  ;;  %v831_v14 = vmax.f32 %v829_v63, %v830_v8  ;;  %v938_v37 = vsel %vm925_vm1, %v1535_v27, 0.0  ;;  %p1946_p4 = scmp.lt.s32.totalorder %s1944_s13, %s1938_s24 }
  0xe3   : > { %v958_v61 = vadd.f32 %v957_v54, %v956_v46  ;;  %v975_v6 = vrot.slane %v974_v62, 2  ;;  %v1013_v11 = vadd.f32 %v1012_v2, %v1011_v59  ;;  %v876_v44 = vrot.slane %v868_v22, %v867_v9  ;;  %s2621_s22 = scalar_lea.hbm %s2847_s30, %s2499_s21  ;;  %p1941_p1 = pneg %p1940_p0 }
  0xe4   : > { %v994_v10 = vrot.slane %v993_v0, 2  ;;  %v825_v17 = vrot.slane %v824_v12, 1  ;;  %v832_v20 = vrot.slane %v831_v14, 1  ;;  %v939_v45 = vrot.slane %v938_v37, 4  ;;  %p1947_p5 = por %p1946_p4, %p1945_p3 }
  0xe5   : > { %v959_v5 = vrot.slane %v958_v61, 1  ;;  %v976_v13 = vadd.f32 %v975_v6, %v974_v62  ;;  %v1014_v16 = vrot.slane %v1013_v11, 2  ;;  %v883_v47 = vrot.slane %v869_v36, %v867_v9 }
  0xe6   : > { %v995_v15 = vadd.f32 %v994_v10, %v993_v0  ;;  %v2565_v26 = vmax.f32 %v824_v12, %v825_v17  ;;  %v2570_v29 = vmax.f32 %v831_v14, %v832_v20  ;;  %v940_v48 = vadd.f32 %v939_v45, %v938_v37  ;;  %p1948_p6 = pnand %p1947_p5, %p1941_p1 }
  0xe7   : > { %v960_v18 = vadd.f32 %v959_v5, %v958_v61  ;;  %v977_v19 = vrot.slane %v976_v13, 1  ;;  %v1015_v25 = vadd.f32 %v1014_v16, %v1013_v11  ;;  %v1533_v49 = vadd.s32 4294967295, %v876_v44 }
  0xe8   : > { %v996_v24 = vrot.slane %v995_v15, 1  ;;  %v834_v4 = vsub.f32 %v2531_v32, %v2565_v26  ;;  %v835_v35 = vsub.f32 %v2540_v41, %v2570_v29  ;;  %v888_v50 = vsub.s32 0, %v2523_v21 }
  0xe9   : > { %v978_v28 = vadd.f32 %v977_v19, %v976_v13  ;;  %v1016_v31 = vrot.slane %v1015_v25, 1  ;;  %v941_v51 = vrot.slane %v940_v48, 2  ;;  %v1534_v52 = vadd.s32 4294967295, %v883_v47 }
  0xea   : > { %v997_v30 = vadd.f32 %v996_v24, %v995_v15  ;;  %v836_v40 = vmul.f32 1.442695, %v834_v4  ;;  %v838_v42 = vmul.f32 1.442695, %v835_v35  ;;  %v889_v54 = vrot.slane %v1533_v49, %v888_v50 }
  0xeb   : > { %v979_v33 = vadd.f32 %v978_v28, %v960_v18  ;;  %v1017_v39 = vadd.f32 %v1016_v31, %v1015_v25  ;;  %v942_v53 = vadd.f32 %v941_v51, %v940_v48  ;;  %v893_v56 = vrot.slane %v1534_v52, %v888_v50  ;;  %v918_v51 = vld [vmem:[#allocation2] sm:$0x1] }
  0xec   : > { %1678 = vpow2.f32 %v836_v40  ;;  %vm894_vm7 = vcmp.eq.s32.totalorder %v2523_v21, %v889_v54  ;;  %vm921_vm9 = vcmask 1041409  }
  0xed   : > { %v998_v1 = vadd.f32 %v997_v30, %v979_v33  ;;  %v1018_v43 = vadd.f32 %v1017_v39, %v1001_v34  ;;  %1680 = vpow2.f32 %v838_v42  ;;  %v943_v55 = vrot.slane %v942_v53, 1 }
  0xee   : > { %vm895_vm8 = vcmp.eq.s32.totalorder %v2523_v21, %v893_v56  ;;  %v896_v7 = vsel %vm894_vm7, %v2531_v32, 0.0 }
  0xef   : > { %v999_v46 = vadd.f32 %v998_v1, %v947_v38  ;;  %1019 = vst [vmem:[#allocation5] sm:$0x1] %v1018_v43  ;;  %v944_v60 = vadd.f32 %v943_v55, %v942_v53  ;;  %v897_v9 = vsel %vm895_vm8, %v2540_v41, 0.0  ;;  %v898_v12 = vsel %vm819_vm0, %v896_v7, 0.0 }
  0xf0   : > { %v905_v21 = vsel %vm819_vm0, %v897_v9, 0.0  ;;  %v899_v16 = vrot.slane %v898_v12, 4 }
  0xf1   : > { %1000 = vst [vmem:[#allocation4] sm:$0x1] %v999_v46  ;;  %v945_v62 = vadd.f32 %v944_v60, %v935_v57  ;;  %v906_v18 = vrot.slane %v905_v21, 4 }
  0xf2   : > { %v900_v32 = vadd.f32 %v899_v16, %v898_v12 }
  0xf3   : > { %946 = vst [vmem:[#allocation3] sm:$0x1] %v945_v62  ;;  %v907_v25 = vadd.f32 %v906_v18, %v905_v21 }
  0xf4   : > { %v901_v41 = vrot.slane %v900_v32, 2 }
  0xf5   : > { %v908_v27 = vrot.slane %v907_v25, 2 }
  0xf6   : > { %v1063_v59 = vld [vmem:[#allocation5] sm:$0x1]  ;;  %v902_v28 = vadd.f32 %v901_v41, %v900_v32 }
  0xf7   : > { %v1064_v0 = vsel %vm1024_vm6, %v1063_v59, 0.0  ;;  %v909_v30 = vadd.f32 %v908_v27, %v907_v25 }
  0xf8   : > { %v1050_v58 = vld [vmem:[#allocation4] sm:$0x1]  ;;  %v903_v31 = vrot.slane %v902_v28, 1 }
  0xf9   : > { %v1051_v61 = vsel %vm1024_vm6, %v1050_v58, 0.0  ;;  %v1679_v63 = vpop.eup %1678  ;;  %v910_v4 = vrot.slane %v909_v30, 1 }
  0xfa   : > { %1052 = vadd.xlane.f32.xlu1 %v1051_v61  ;;  %v1681_v2 = vpop.eup %1680  ;;  %v840_v3 = vsel %vm819_vm0, %v1679_v63, 0.0  ;;  %v904_v36 = vadd.f32 %v903_v31, %v902_v28 }
  0xfb   : > { %v841_v5 = vrot.slane %v840_v3, 4  ;;  %v847_v6 = vsel %vm819_vm0, %v1681_v2, 0.0  ;;  %v911_v38 = vadd.f32 %v910_v4, %v909_v30 }
  0xfc   : > { %v848_v8 = vrot.slane %v847_v6, 4 }
  0xfd   : > { %v842_v10 = vadd.f32 %v841_v5, %v840_v3 }
  0xfe   : > { %1065 = vadd.xlane.f32.xlu1 %v1064_v0  ;;  %v849_v11 = vadd.f32 %v848_v8, %v847_v6 }
  0xff   : > { %v843_v13 = vrot.slane %v842_v10, 2 }
 0x100   : > { %v850_v14 = vrot.slane %v849_v11, 2 }
 0x101   : > { %v844_v15 = vadd.f32 %v843_v13, %v842_v10 }
 0x102   : > { %v851_v17 = vadd.f32 %v850_v14, %v849_v11 }
 0x103   : > { %v845_v19 = vrot.slane %v844_v15, 1 }
 0x104   : > { %v852_v20 = vrot.slane %v851_v17, 1 }
 0x105   : > { %v846_v22 = vadd.f32 %v845_v19, %v844_v15 }
 0x106   : > { %v853_v24 = vadd.f32 %v852_v20, %v851_v17 }
 0x107   : > { %1682 = vlog2.f32 %v846_v22 }
 0x108   : > { %1684 = vlog2.f32 %v853_v24 }
 0x114   : > { %v1683_v33 = vpop.eup %1682 }
 0x115   : > { %v1685_v34 = vpop.eup %1684  ;;  %v855_v35 = vmul.f32 0.6931472, %v1683_v33 }
 0x116   : > { %v857_v37 = vmul.f32 0.6931472, %v1685_v34 }
 0x117   : > { %v858_v39 = vadd.f32 %v855_v35, %v2565_v26 }
 0x118   : > { %v859_v40 = vadd.f32 %v857_v37, %v2570_v29  ;;  %v1037_v29 = vld [vmem:[#allocation3] sm:$0x1] }
 0x119   : > { %v912_v1 = vsub.f32 %v858_v39, %v904_v36  ;;  %v1038_v55 = vsel %vm1024_vm6, %v1037_v29, 0.0 }
 0x11a   : > { %v913_v42 = vsub.f32 %v859_v40, %v911_v38 }
 0x11c   : > { %v922_v43 = vsel %vm921_vm9, %v913_v42, %v912_v1 }
 0x11d   : > { %v924_v44 = vsel %vm2561_vm5, %v922_v43, 0.0 }
 0x11e   : > { %v926_v45 = vsel %vm925_vm1, %v924_v44, 0.0 }
 0x11f   : > { %v927_v46 = vrot.slane %v926_v45, 4 }
 0x121   : > { %v928_v47 = vadd.f32 %v927_v46, %v926_v45 }
 0x123   : > { %v929_v48 = vrot.slane %v928_v47, 2 }
 0x125   : > { %v930_v49 = vadd.f32 %v929_v48, %v928_v47 }
 0x127   : > { %v931_v50 = vrot.slane %v930_v49, 1 }
 0x129   : > { %v932_v52 = vadd.f32 %v931_v50, %v930_v49 }
 0x12b   : > { %v933_v53 = vadd.f32 %v932_v52, %v918_v51 }
 0x12d   : > { %934 = vst [vmem:[#allocation2] sm:$0x1] %v933_v53 }
 0x134   : > { %v1023_v26 = vld [vmem:[#allocation2] sm:$0x1] }
 0x135   : > { %v1025_v54 = vsel %vm1024_vm6, %v1023_v26, 0.0 }
 0x136   : > { %1026 = vadd.xlane.f32.xlu0 %v1025_v54 }
 0x13a   : > { %1039 = vadd.xlane.f32.xlu0 %v1038_v55 }
 0x183   : > { %v1053_v23 = vpop.xlane.xlu1 %1052 }
 0x184   : > { %v1054_v57 = vrot.slane %v1053_v23, 4 }
 0x186   : > { %v1055_v59 = vadd.f32 %v1054_v57, %v1053_v23 }
 0x187   : > { %v1066_v56 = vpop.xlane.xlu1 %1065 }
 0x188   : > { %v1067_v58 = vrot.slane %v1066_v56, 4  ;;  %v1056_v0 = vrot.slane %v1055_v59, 2 }
 0x18a   : > { %v1068_v61 = vadd.f32 %v1067_v58, %v1066_v56  ;;  %v1057_v9 = vadd.f32 %v1056_v0, %v1055_v59 }
 0x18c   : > { %v1069_v3 = vrot.slane %v1068_v61, 2  ;;  %v1058_v14 = vrot.slane %v1057_v9, 1 }
 0x18e   : > { %v1070_v10 = vadd.f32 %v1069_v3, %v1068_v61  ;;  %v1059_v18 = vadd.f32 %v1058_v14, %v1057_v9 }
 0x190   : > { %v1071_v16 = vrot.slane %v1070_v10, 1 }
 0x192   : > { %v1072_v19 = vadd.f32 %v1071_v16, %v1070_v10 }
 0x1bf   : > { %v1027_v60 = vpop.xlane.xlu0 %1026 }
 0x1c0   : > { %v1028_v62 = vrot.slane %v1027_v60, 4 }
 0x1c2   : > { %v1029_v63 = vadd.f32 %v1028_v62, %v1027_v60 }
 0x1c3   : > { %v1040_v2 = vpop.xlane.xlu0 %1039 }
 0x1c4   : > { %v1030_v5 = vrot.slane %v1029_v63, 2  ;;  %v1041_v6 = vrot.slane %v1040_v2, 4 }
 0x1c6   : > { %v1042_v7 = vadd.f32 %v1041_v6, %v1040_v2  ;;  %v1031_v8 = vadd.f32 %v1030_v5, %v1029_v63 }
 0x1c8   : > { %v1043_v11 = vrot.slane %v1042_v7, 2  ;;  %v1032_v12 = vrot.slane %v1031_v8, 1 }
 0x1ca   : > { %v1044_v13 = vadd.f32 %v1043_v11, %v1042_v7  ;;  %v1033_v21 = vadd.f32 %v1032_v12, %v1031_v8 }
 0x1cc   : > { %1546 = vpush %v1033_v21  ;;  %v1045_v15 = vrot.slane %v1044_v13, 1 }
 0x1ce   : > { %v1046_v17 = vadd.f32 %v1045_v15, %v1044_v13 }
 0x1d0   : > { %1548 = vpush %v1046_v17 }
 0x1d1   : > { %1550 = vpush %v1059_v18 }
 0x1d2   : > { %1552 = vpush %v1072_v19 }
 0x1fd   : > { %s1547_s3 = spop %1546 }
 0x1fe   : > { %v1035_v20 = vstv %s1547_s3 }
 0x1ff   : > { %1036 = vst [vmem:[%s770_s28] sm:$0xff] %v1035_v20 }
 0x200   : > { %1951 = shalt.err (!%p1948_p6)
}
 0x201   : > { %s1952_s28 = scalar_lea.hbm %s2611_s18, 128  ;;  %s1956_s5 = scalar_lea.hbm %s2846_s17, 256 }
 0x202   : > { %p1953_p7 = scmp.ne.s32.totalorder %s2611_s18, %s1952_s28  ;;  %p1957_p2 = scmp.lt.s32.totalorder %s2611_s18, %s2846_s17 }
 0x203   : > { %p1958_p8 = scmp.lt.s32.totalorder %s1956_s5, %s1952_s28 }
 0x204   : > { %p1954_p10 = pnand %p1953_p7, %p2262_p9 }
 0x205   : > { %p1959_p0 = por %p1958_p8, %p1957_p2 }
 0x206   : > { %p1955_p13 = pneg %p1954_p10 }
 0x208   : > { %p1960_p1 = pnand %p1959_p0, %p1955_p13 }
 0x20a   : > { %1963 = shalt.err (!%p1960_p1)
}
 0x20b   : > { %1572 = dma.vmem_to_hbm [thread:$0]  (%p2262_p9), %s2613_s1, 128, %s2611_s18, %s1077_s12  }
 0x20c   : > { %s1549_s24 = spop %1548  ;;  %s2848_s13 = sld [smem:[#allocation53_spill]] }
 0x20d   : > { %v1048_v22 = vstv %s1549_s24  ;;  %s1551_s3 = spop %1550  ;;  %s2849_s10 = sld [smem:[#allocation54_spill]] }
 0x20e   : > { %1049 = vst [vmem:[%s777_s27] sm:$0xff] %v1048_v22  ;;  %v1061_v32 = vstv %s1551_s3  ;;  %s2654_s15 = spop %1552  ;;  %s2850_s1 = scalar_lea.vmem [#allocation24], %s2455_s29 }
 0x20f   : > { %1062 = vst [vmem:[%s2850_s1] sm:$0xff] %v1061_v32  ;;  %v1074_v24 = vstv %s2654_s15  ;;  %s1082_s18 = scalar_lea.sflag [#allocation23], %s2464_s9  ;;  %s1964_s12 = scalar_lea.vmem %s2623_s14, 128 }
 0x210   : > { %p1965_p3 = scmp.ne.s32.totalorder %s2623_s14, %s1964_s12  ;;  %s2139_s24 = smov [#allocation22]  }
 0x211   : > { %s1968_s27 = sshll.u32 %s2139_s24, 4  ;;  %s1969_s27 = int_to_ptr.vmem [resolvable:$false] %s1968_s27 }
 0x212   : > { %s2650_s28 = scalar_lea.hbm %s2848_s13, %s2499_s21  ;;  %p1966_p4 = pnand %p1965_p3, %p2262_p9 }
 0x213   : > { %s2660_s2 = scalar_lea.hbm %s2849_s10, %s2499_s21  ;;  %s1970_s23 = scalar_lea.vmem %s1969_s27, 256 }
 0x214   : > { %p1967_p5 = pneg %p1966_p4  ;;  %p1971_p6 = scmp.lt.s32.totalorder %s2623_s14, %s1969_s27 }
 0x215   : > { %p1972_p7 = scmp.lt.s32.totalorder %s1970_s23, %s1964_s12 }
 0x217   : > { %p1973_p10 = por %p1972_p7, %p1971_p6 }
 0x219   : > { %p1974_p13 = pnand %p1973_p10, %p1967_p5 }
 0x21b   : > { %1977 = shalt.err (!%p1974_p13)
}
 0x21c   : > { %s1978_s21 = scalar_lea.hbm %s2621_s22, 128  ;;  %s1982_s15 = scalar_lea.hbm %s2847_s30, 256 }
 0x21d   : > { %p1979_p2 = scmp.ne.s32.totalorder %s2621_s22, %s1978_s21  ;;  %p1983_p1 = scmp.lt.s32.totalorder %s2621_s22, %s2847_s30 }
 0x21e   : > { %p1984_p3 = scmp.lt.s32.totalorder %s1982_s15, %s1978_s21 }
 0x21f   : > { %p1980_p8 = pnand %p1979_p2, %p2262_p9 }
 0x220   : > { %p1985_p4 = por %p1984_p3, %p1983_p1 }
 0x221   : > { %p1981_p0 = pneg %p1980_p8 }
 0x223   : > { %p1986_p5 = pnand %p1985_p4, %p1981_p0 }
 0x225   : > { %1989 = shalt.err (!%p1986_p5)
}
 0x226   : > { %1573 = dma.vmem_to_hbm [thread:$0]  (%p2262_p9), %s2623_s14, 128, %s2621_s22, %s1082_s18  }
 0x227   : > { %s2851_s1 = scalar_lea.vmem [#allocation25], %s2455_s29  ;;  %s1990_s12 = scalar_lea.vmem %s2598_s16, 128 }
 0x228   : > { %1075 = vst [vmem:[%s2851_s1] sm:$0xff] %v1074_v24  ;;  %p1991_p6 = scmp.ne.s32.totalorder %s2598_s16, %s1990_s12  ;;  %s2140_s24 = smov [#allocation24]  }
 0x229   : > { %s1994_s27 = sshll.u32 %s2140_s24, 4  ;;  %s1995_s27 = int_to_ptr.vmem [resolvable:$false] %s1994_s27 }
 0x22a   : > { %p1992_p7 = pnand %p1991_p6, %p2262_p9  ;;  %s1996_s23 = scalar_lea.vmem %s1995_s27, 256 }
 0x22b   : > { %p1997_p13 = scmp.lt.s32.totalorder %s2598_s16, %s1995_s27  ;;  %p1998_p2 = scmp.lt.s32.totalorder %s1996_s23, %s1990_s12 }
 0x22c   : > { %p1993_p10 = pneg %p1992_p7 }
 0x22d   : > { %p1999_p8 = por %p1998_p2, %p1997_p13 }
 0x22f   : > { %p2000_p0 = pnand %p1999_p8, %p1993_p10 }
 0x231   : > { %2003 = shalt.err (!%p2000_p0)
}
 0x232   : > { %s2004_s29 = scalar_lea.hbm %s2650_s28, 128  ;;  %s2008_s21 = scalar_lea.hbm %s2848_s13, 256 }
 0x233   : > { %p2005_p1 = scmp.ne.s32.totalorder %s2650_s28, %s2004_s29  ;;  %p2009_p5 = scmp.lt.s32.totalorder %s2650_s28, %s2848_s13 }
 0x234   : > { %p2010_p6 = scmp.lt.s32.totalorder %s2008_s21, %s2004_s29 }
 0x235   : > { %p2006_p3 = pnand %p2005_p1, %p2262_p9 }
 0x236   : > { %p2011_p7 = por %p2010_p6, %p2009_p5 }
 0x237   : > { %p2007_p4 = pneg %p2006_p3 }
 0x239   : > { %p2012_p10 = pnand %p2011_p7, %p2007_p4 }
 0x23b   : > { %2015 = shalt.err (!%p2012_p10)
}
 0x23c   : > { %1574 = dma.vmem_to_hbm [thread:$0]  (%p2262_p9), %s2598_s16, 128, %s2650_s28, %s1082_s18  }
 0x23d   : > { %s1092_s15 = scalar_lea.sflag [#allocation26], %s2452_s0  ;;  %s2016_s5 = scalar_lea.vmem %s2615_s26, 128 }
 0x23e   : > { %p2017_p13 = scmp.ne.s32.totalorder %s2615_s26, %s2016_s5  ;;  %s2141_s19 = smov [#allocation25]  }
 0x23f   : > { %s2020_s1 = sshll.u32 %s2141_s19, 4  ;;  %s2021_s1 = int_to_ptr.vmem [resolvable:$false] %s2020_s1 }
 0x240   : > { %p2018_p2 = pnand %p2017_p13, %p2262_p9  ;;  %s2022_s12 = scalar_lea.vmem %s2021_s1, 256 }
 0x241   : > { %p2023_p0 = scmp.lt.s32.totalorder %s2615_s26, %s2021_s1  ;;  %p2024_p1 = scmp.lt.s32.totalorder %s2022_s12, %s2016_s5 }
 0x242   : > { %p2019_p8 = pneg %p2018_p2 }
 0x243   : > { %p2025_p3 = por %p2024_p1, %p2023_p0 }
 0x245   : > { %p2026_p4 = pnand %p2025_p3, %p2019_p8 }
 0x247   : > { %2029 = shalt.err (!%p2026_p4)
}
 0x248   : > { %s2030_s9 = scalar_lea.hbm %s2660_s2, 128  ;;  %s2034_s28 = scalar_lea.hbm %s2849_s10, 256 }
 0x249   : > { %p2031_p5 = scmp.ne.s32.totalorder %s2660_s2, %s2030_s9  ;;  %p2035_p10 = scmp.lt.s32.totalorder %s2660_s2, %s2849_s10 }
 0x24a   : > { %p2036_p13 = scmp.lt.s32.totalorder %s2034_s28, %s2030_s9 }
 0x24b   : > { %p2032_p6 = pnand %p2031_p5, %p2262_p9 }
 0x24c   : > { %p2037_p2 = por %p2036_p13, %p2035_p10 }
 0x24d   : > { %p2033_p7 = pneg %p2032_p6 }
 0x24f   : > { %p2038_p8 = pnand %p2037_p2, %p2033_p7 }
 0x251   : > { %2041 = shalt.err (!%p2038_p8)
}
 0x252   : > { %1575 = dma.vmem_to_hbm [thread:$0]  (%p2262_p9), %s2615_s26, 128, %s2660_s2, %s1092_s15  }
 0x253 PF: > { %s2852_s27 = sld [smem:[#allocation35_spill]]  ;;  %p1609_p0 = pnand %p1499_p12, %p2271_p11 }
 0x254   : > { %s2854_s29 = sld [smem:[#allocation39_spill]] }
 0x255   : > { %p1610_p1 = pneg %p1609_p0 }
 0x259   : > { %s1156_s14 = sand.u32 1, %s2852_s27  }
 0x25a   : > { %s1157_s22 = scalar_lea.sflag [#allocation8], %s1156_s14 }
 0x25b   : > { %2087 = dma.done.wait (%p1610_p1), %s1157_s22, 128  }
 0x25c   : > { %2089 = vsyncadd (%p1610_p1), %s1157_s22, 4294967168  ;;  %s2855_s21 = sadd.s32 4294967294, %s2854_s29  }
 0x25d   : > { %s1165_s11 = sand.u32 1, %s2855_s21  }
 0x25e   : > { %s1166_s3 = scalar_lea.sflag [#allocation23], %s1165_s11 }
 0x25f   : > { %2091 = dma.done.wait (%p1610_p1), %s1166_s3, 256  }
 0x260   : > { %2093 = vsyncadd (%p1610_p1), %s1166_s3, 4294967040  ;;  %s1184_s20 = scalar_lea.sflag [#allocation26], %s1156_s14 }
 0x261   : > { %2095 = dma.done.wait (%p1610_p1), %s1184_s20, 128  }
 0x262   : > { %2097 = vsyncadd (%p1610_p1), %s1184_s20, 4294967168  ;;  %s47_s26 = sadd.s32 1, %s2854_s29   ;;  %s2856_s21 = sld [smem:[#allocation36_spill]] }
 0x263   : > { %p44_p9 = scmp.ge.s32.totalorder %s47_s26, 4   ;;  %s2857_s22 = sld [smem:[#allocation37_spill]] }
 0x264   : > { %s2858_s23 = sld [smem:[#allocation44_spill]]  ;;  %s2860_s24 = smov %s2116_s25 }
 0x265   : > { %s2859_s2 = sld [smem:[#allocation41_spill]] }
 0x267   :  { %46 = sbr.rel (!%p44_p9) target bundleno = 28 (0x1c), region = 254 }
 0x26b   : > { %s2861_s25 = smov %s2859_s2 }
 0x26c   :  { %1189 = vsyncpa [#allocation7], 1 }
 0x26d   :  { %1191 = vsyncpa [#allocation7 + $0x1], 1 }
 0x26e   :  { %1192 = vsyncpa [#allocation10], 1 }
 0x26f   :  { %1194 = vsyncpa [#allocation10 + $0x1], 1 }
 0x270   :  { %1195 = vsyncpa [#allocation13], 1 }
 0x271   :  { %1197 = vsyncpa [#allocation13 + $0x1], 1 }
 0x272   :  { %1198 = vsyncpa [#allocation16], 1 }
 0x273   :  { %1200 = vsyncpa [#allocation16 + $0x1], 1 }
 0x274   :  { %1201 = vsyncpa [#allocation19], 1 }
 0x275   :  { %1203 = vsyncpa [#allocation19 + $0x1], 1 }
 0x276   :  { %1204 = vsyncpa [#allocation8], 1 }
 0x277   :  { %1206 = vsyncpa [#allocation8 + $0x1], 1 }
 0x278   :  { %1207 = vsyncpa [#allocation23], 1 }
 0x279   :  { %1209 = vsyncpa [#allocation23 + $0x1], 1 }
 0x27a   :  { %1210 = vsyncpa [#allocation26], 1 }
 0x27b   :  { %1212 = vsyncpa [#allocation26 + $0x1], 1 }

</bundles_post_ra>
